<compile_context>
chip_gen: v7x
topology: tpu7x:2x2x1
jax: 0.10.0
libtpu: 0.0.40
codegen_flags: <defaults>
</compile_context>

<pallas_src>
import functools
import numpy as np
import jax
import jax.numpy as jnp
from jax.experimental import pallas as pl
from jax.experimental.pallas import tpu as pltpu

NZ = 16          # latent dim
NC = 2           # covariate channels
SEQ = 24         # input sequence length (implied by c.repeat(1, 1, 24))
BN_EPS = 1e-5
LANE = 128


# ----------------------------------------------------------------------------
# Host-side (one-time) lowering of Conv1d / BatchNorm bookkeeping to matrices.
# ----------------------------------------------------------------------------
def _conv1d_as_matrix(w, l_in, stride, pad):
    """Conv1d weight (Cout, Cin, K) -> dense (Cin*Lin, Cout*Lout) matrix."""
    w = np.asarray(w, dtype=np.float32)
    c_out, c_in, k = w.shape
    l_out = (l_in + 2 * pad - k) // stride + 1
    m = np.zeros((c_in * l_in, c_out * l_out), dtype=np.float32)
    for co in range(c_out):
        for t in range(l_out):
            for ci in range(c_in):
                for kk in range(k):
                    p = stride * t + kk - pad
                    if 0 <= p < l_in:
                        m[ci * l_in + p, co * l_out + t] = w[co, ci, kk]
    return m, l_out


def _group_matrices(c, l, width_pad):
    """G: (width_pad, C) one-hot channel-group matrix (zero rows in padding)."""
    g = np.zeros((width_pad, c), dtype=np.float32)
    for ch in range(c):
        g[ch * l:(ch + 1) * l, ch] = 1.0
    return g, np.ascontiguousarray(g.T)


def _pad_to(m, rows, cols):
    out = np.zeros((rows, cols), dtype=np.float32)
    out[: m.shape[0], : m.shape[1]] = m
    return out


def _round_up(n, mult=LANE):
    return ((n + mult - 1) // mult) * mult


def prepare_encoder(params):
    """Build all kernel-side matrices once (call at parameter-init time)."""
    w1, w2, w3, w4, gammas, betas = params

    m1, l1 = _conv1d_as_matrix(w1, SEQ, 2, 1)   # 24 -> 12
    m2, l2 = _conv1d_as_matrix(w2, l1, 2, 1)    # 12 -> 6
    m3, l3 = _conv1d_as_matrix(w3, l2, 2, 1)    # 6  -> 3
    m4, l4 = _conv1d_as_matrix(w4, l3, 1, 0)    # 3  -> 2

    in_pad = _round_up((2 + NC) * SEQ)          # 96  -> 128
    w1p = _round_up(8 * l1)                     # 96  -> 128
    w2p = _round_up(32 * l2)                    # 192 -> 256
    w3p = _round_up(128 * l3)                   # 384 (already aligned)

    m1p = _pad_to(m1, in_pad, w1p)
    m2p = _pad_to(m2, w1p, w2p)
    m3p = _pad_to(m3, w2p, w3p)

    g1, gt1 = _group_matrices(8, l1, w1p)
    g2, gt2 = _group_matrices(32, l2, w2p)
    g3, gt3 = _group_matrices(128, l3, w3p)

    # Pre-folded head: columns t=0 (mu) then t=1 (log_sigma) of the last conv.
    head = np.concatenate([m4[:, 0::l4], m4[:, 1::l4]], axis=1)   # (384, 2*NZ)
    head = _pad_to(head, w3p, 2 * NZ)

    mats = (m1p, g1, gt1, np.asarray(gammas[0]).reshape(1, -1), np.asarray(betas[0]).reshape(1, -1),
            m2p, g2, gt2, np.asarray(gammas[1]).reshape(1, -1), np.asarray(betas[1]).reshape(1, -1),
            m3p, g3, gt3, np.asarray(gammas[2]).reshape(1, -1), np.asarray(betas[2]).reshape(1, -1),
            head)
    mats = tuple(jnp.asarray(a, jnp.float32) for a in mats)
    return {"mats": mats, "lens": (l1, l2, l3), "in_pad": in_pad}


# ----------------------------------------------------------------------------
# The Pallas kernel: whole forward on one core (everything fits in VMEM).
# ----------------------------------------------------------------------------
def _encoder_kernel(layer_lens,
                    y_ref, eps_ref,
                    m1_ref, g1_ref, gt1_ref, gam1_ref, bet1_ref,
                    m2_ref, g2_ref, gt2_ref, gam2_ref, bet2_ref,
                    m3_ref, g3_ref, gt3_ref, gam3_ref, bet3_ref,
                    head_ref,
                    out_ref):
    batch = y_ref.shape[0]

    def conv_bn_lrelu(x, m_ref, g_ref, gt_ref, gam_ref, bet_ref, l_out):
        inv_n = 1.0 / float(batch * l_out)            # tied to actual batch
        # Conv1d as one MXU matmul: (B, Kp) @ (Kp, CLp)
        a = jnp.dot(x, m_ref[...], preferred_element_type=jnp.float32)
        # BatchNorm1d (training-mode batch stats), stacked into one push:
        stats = jnp.concatenate(
            [jnp.sum(a, axis=0, keepdims=True),
             jnp.sum(a * a, axis=0, keepdims=True)], axis=0)          # (2, CLp)
        red = jnp.dot(stats, g_ref[...],
                      preferred_element_type=jnp.float32) * inv_n     # (2, C)
        mean = red[0:1, :]
        var = jnp.maximum(red[1:2, :] - mean * mean, 0.0)             # clamp
        inv_std = jax.lax.rsqrt(var + BN_EPS)
        scale = inv_std * gam_ref[...]                                # (1, C)
        shift = bet_ref[...] - mean * scale                           # (1, C)
        # Stacked per-channel broadcast back to lanes: one push.
        scsh = jnp.concatenate([scale, shift], axis=0)                # (2, C)
        b = jnp.dot(scsh, gt_ref[...],
                    preferred_element_type=jnp.float32)               # (2, CLp)
        h = a * b[0:1, :] + b[1:2, :]
        # LeakyReLU(0.2)
        return jnp.where(h > 0, h, 0.2 * h)

    h = conv_bn_lrelu(y_ref[...], m1_ref, g1_ref, gt1_ref, gam1_ref, bet1_ref,
                      layer_lens[0])
    h = conv_bn_lrelu(h, m2_ref, g2_ref, gt2_ref, gam2_ref, bet2_ref,
                      layer_lens[1])
    h = conv_bn_lrelu(h, m3_ref, g3_ref, gt3_ref, gam3_ref, bet3_ref,
                      layer_lens[2])

    # Folded head: one dot gives [mu | log_sigma] directly.
    z = jnp.dot(h, head_ref[...], preferred_element_type=jnp.float32)  # (B, 2*NZ)
    mu = z[:, :NZ]
    ls = z[:, NZ:]
    out = mu + eps_ref[...] * jnp.exp(ls * 0.5)        # reparametrization
    # Single output slab: [out | mu | log_sigma]
    out_ref[...] = jnp.concatenate([out, z], axis=-1)


# ----------------------------------------------------------------------------
# Wrapper (jitted; prepared matrices are plain array args, lens are static).
# ----------------------------------------------------------------------------
@functools.partial(jax.jit, static_argnums=(0, 1))
def _forward(lens, in_pad, mats, x, c, eps):
    batch = x.shape[0]
    c_in = x.shape[1] + c.shape[1]

    # torch.concat([x, c.repeat(1, 1, 24)], dim=1) -> channel-major flatten.
    y = jnp.concatenate([x, jnp.tile(c, (1, 1, SEQ))], axis=1)   # (B, 2+nc, 24)
    y_flat = y.reshape(batch, c_in * SEQ)
    y_flat = jnp.pad(y_flat, ((0, 0), (0, in_pad - c_in * SEQ)))

    kernel = functools.partial(_encoder_kernel, lens)
    vmem = pl.BlockSpec(memory_space=pltpu.MemorySpace.VMEM)
    res = pl.pallas_call(
        kernel,
        out_shape=jax.ShapeDtypeStruct((batch, 3 * NZ), jnp.float32),
        in_specs=[vmem] * (2 + len(mats)),
        out_specs=vmem,
    )(y_flat, eps, *mats)

    out = res[:, :NZ].reshape(batch, NZ, 1)
    mu = res[:, NZ:2 * NZ]
    ls = res[:, 2 * NZ:3 * NZ]
    return out, mu, ls


def cdepth_cnn_encoder(prepared, x, c, eps):
    """x: (B, 2, 24), c: (B, nc, 1), eps: (B, nz) -> (out(B,nz,1), mu, logvar)."""
    return _forward(prepared["lens"], prepared["in_pad"], prepared["mats"],
                    x, c, eps)


# ----------------------------------------------------------------------------
# Pure-JAX reference (for correctness check)
# ----------------------------------------------------------------------------
def _ref_forward(x, c, params, eps):
    w1, w2, w3, w4, gammas, betas = params
    y = jnp.concatenate([x, jnp.tile(c, (1, 1, SEQ))], axis=1)
    h = y
    cfg = [(w1, 2, 1), (w2, 2, 1), (w3, 2, 1), (w4, 1, 0)]
    for i, (w, s, p) in enumerate(cfg):
        h = jax.lax.conv_general_dilated(
            h, jnp.asarray(w, jnp.float32), window_strides=(s,),
            padding=[(p, p)], dimension_numbers=('NCH', 'OIH', 'NCH'))
        if i < 3:
            mean = jnp.mean(h, axis=(0, 2), keepdims=True)
            var = jnp.mean((h - mean) ** 2, axis=(0, 2), keepdims=True)
            h = (h - mean) * jax.lax.rsqrt(var + BN_EPS)
            h = gammas[i].reshape(1, -1, 1) * h + betas[i].reshape(1, -1, 1)
            h = jnp.where(h > 0, h, 0.2 * h)
    mu, ls = h[:, :, 0], h[:, :, 1]
    out = mu + eps * jnp.exp(ls / 2)
    return out.reshape(x.shape[0], NZ, 1), mu, ls


if __name__ == "__main__":
    key = jax.random.PRNGKey(0)
    kx, kc, keps, k1, k2, k3, k4 = jax.random.split(key, 7)
    B = 4

    x = jax.random.normal(kx, (B, 2, SEQ), jnp.float32)
    c = jax.random.normal(kc, (B, NC, 1), jnp.float32)
    # TODO(synk): torch.randn_like(std) — Gaussian noise sampled in JAX and fed in.
    eps = jax.random.normal(keps, (B, NZ), jnp.float32)

    def init_w(k, cout, cin, ksz):
        bound = 1.0 / np.sqrt(cin * ksz)
        return jax.random.uniform(k, (cout, cin, ksz), jnp.float32, -bound, bound)

    w1 = np.asarray(init_w(k1, 8, 2 + NC, 4))
    w2 = np.asarray(init_w(k2, 32, 8, 4))
    w3 = np.asarray(init_w(k3, 128, 32, 3))
    w4 = np.asarray(init_w(k4, NZ, 128, 2))
    gammas = (jnp.ones((8,), jnp.float32), jnp.ones((32,), jnp.float32),
              jnp.ones((128,), jnp.float32))
    betas = (jnp.zeros((8,), jnp.float32), jnp.zeros((32,), jnp.float32),
             jnp.zeros((128,), jnp.float32))
    params = (w1, w2, w3, w4, gammas, betas)

    # One-time host-side preparation (cached across forward calls).
    prepared = prepare_encoder(params)

    out, mu, ls = cdepth_cnn_encoder(prepared, x, c, eps)
    jax.block_until_ready((out, mu, ls))

    ref_out, ref_mu, ref_ls = _ref_forward(x, c, params, eps)
    np.testing.assert_allclose(np.asarray(mu), np.asarray(ref_mu), rtol=1e-3, atol=1e-4)
    np.testing.assert_allclose(np.asarray(ls), np.asarray(ref_ls), rtol=1e-3, atol=1e-4)
    np.testing.assert_allclose(np.asarray(out), np.asarray(ref_out), rtol=1e-3, atol=1e-4)
    print("KERNEL_OK")
</pallas_src>

<mosaic_0001>
module attributes {stable_mosaic.version = 11 : i64} {
  func.func @_encoder_kernel(%arg0: memref<4x128xf32, #tpu.memory_space<vmem>>, %arg1: memref<4x16xf32, #tpu.memory_space<vmem>>, %arg2: memref<128x128xf32, #tpu.memory_space<vmem>>, %arg3: memref<128x8xf32, #tpu.memory_space<vmem>>, %arg4: memref<8x128xf32, #tpu.memory_space<vmem>>, %arg5: memref<1x8xf32, #tpu.memory_space<vmem>>, %arg6: memref<1x8xf32, #tpu.memory_space<vmem>>, %arg7: memref<128x256xf32, #tpu.memory_space<vmem>>, %arg8: memref<256x32xf32, #tpu.memory_space<vmem>>, %arg9: memref<32x256xf32, #tpu.memory_space<vmem>>, %arg10: memref<1x32xf32, #tpu.memory_space<vmem>>, %arg11: memref<1x32xf32, #tpu.memory_space<vmem>>, %arg12: memref<256x384xf32, #tpu.memory_space<vmem>>, %arg13: memref<384x128xf32, #tpu.memory_space<vmem>>, %arg14: memref<128x384xf32, #tpu.memory_space<vmem>>, %arg15: memref<1x128xf32, #tpu.memory_space<vmem>>, %arg16: memref<1x128xf32, #tpu.memory_space<vmem>>, %arg17: memref<384x32xf32, #tpu.memory_space<vmem>>, %arg18: memref<4x48xf32, #tpu.memory_space<vmem>>) attributes {dimension_semantics = [], scalar_prefetch = 0 : i64, scratch_operands = 0 : i64, tpu.core_type = #tpu.core_type<tc>} {
    %c0 = arith.constant 0 : index
    %c0_0 = arith.constant 0 : index
    %0 = vector.load %arg0[%c0, %c0_0] : memref<4x128xf32, #tpu.memory_space<vmem>>, vector<4x128xf32>
    %c0_1 = arith.constant 0 : index
    %c0_2 = arith.constant 0 : index
    %1 = vector.load %arg2[%c0_1, %c0_2] : memref<128x128xf32, #tpu.memory_space<vmem>>, vector<128x128xf32>
    %cst = arith.constant dense<0.000000e+00> : vector<4x128xf32>
    %2 = tpu.matmul %0, %1, %cst {dimension_numbers = #tpu.dot_dimension_numbers<[1], [0], [0], [1], [0, 0, 1, 1], [], []>} : vector<4x128xf32>, vector<128x128xf32>, vector<4x128xf32> -> vector<4x128xf32>
    %cst_3 = arith.constant dense<0.000000e+00> : vector<128xf32>
    %3 = vector.multi_reduction <add>, %2, %cst_3 [0] : vector<4x128xf32> to vector<128xf32>
    %4 = vector.shape_cast %3 : vector<128xf32> to vector<1x128xf32>
    %5 = arith.mulf %2, %2 : vector<4x128xf32>
    %cst_4 = arith.constant dense<0.000000e+00> : vector<128xf32>
    %6 = vector.multi_reduction <add>, %5, %cst_4 [0] : vector<4x128xf32> to vector<128xf32>
    %7 = vector.shape_cast %6 : vector<128xf32> to vector<1x128xf32>
    %8 = tpu.concatenate %4, %7 in 0 : vector<1x128xf32>, vector<1x128xf32> -> vector<2x128xf32>
    %c0_5 = arith.constant 0 : index
    %c0_6 = arith.constant 0 : index
    %9 = vector.load %arg3[%c0_5, %c0_6] : memref<128x8xf32, #tpu.memory_space<vmem>>, vector<128x8xf32>
    %cst_7 = arith.constant dense<0.000000e+00> : vector<2x8xf32>
    %10 = tpu.matmul %8, %9, %cst_7 {dimension_numbers = #tpu.dot_dimension_numbers<[1], [0], [0], [1], [0, 0, 1, 1], [], []>} : vector<2x128xf32>, vector<128x8xf32>, vector<2x8xf32> -> vector<2x8xf32>
    %cst_8 = arith.constant 0.020833334 : f32
    %11 = vector.broadcast %cst_8 : f32 to vector<2x8xf32>
    %12 = arith.mulf %10, %11 : vector<2x8xf32>
    %13 = vector.extract_strided_slice %12 {offsets = [0, 0], sizes = [1, 8], strides = [1, 1]} : vector<2x8xf32> to vector<1x8xf32>
    %14 = vector.extract_strided_slice %12 {offsets = [1, 0], sizes = [1, 8], strides = [1, 1]} : vector<2x8xf32> to vector<1x8xf32>
    %15 = arith.mulf %13, %13 : vector<1x8xf32>
    %16 = arith.subf %14, %15 : vector<1x8xf32>
    %cst_9 = arith.constant 0.000000e+00 : f32
    %17 = vector.broadcast %cst_9 : f32 to vector<1x8xf32>
    %18 = arith.maximumf %16, %17 : vector<1x8xf32>
    %cst_10 = arith.constant 9.99999974E-6 : f32
    %19 = vector.broadcast %cst_10 : f32 to vector<1x8xf32>
    %20 = arith.addf %18, %19 : vector<1x8xf32>
    %21 = math.rsqrt %20 : vector<1x8xf32>
    %c0_11 = arith.constant 0 : index
    %c0_12 = arith.constant 0 : index
    %22 = vector.load %arg5[%c0_11, %c0_12] : memref<1x8xf32, #tpu.memory_space<vmem>>, vector<1x8xf32>
    %23 = arith.mulf %21, %22 : vector<1x8xf32>
    %c0_13 = arith.constant 0 : index
    %c0_14 = arith.constant 0 : index
    %24 = vector.load %arg6[%c0_13, %c0_14] : memref<1x8xf32, #tpu.memory_space<vmem>>, vector<1x8xf32>
    %25 = arith.mulf %13, %23 : vector<1x8xf32>
    %26 = arith.subf %24, %25 : vector<1x8xf32>
    %27 = tpu.concatenate %23, %26 in 0 : vector<1x8xf32>, vector<1x8xf32> -> vector<2x8xf32>
    %c0_15 = arith.constant 0 : index
    %c0_16 = arith.constant 0 : index
    %28 = vector.load %arg4[%c0_15, %c0_16] : memref<8x128xf32, #tpu.memory_space<vmem>>, vector<8x128xf32>
    %cst_17 = arith.constant dense<0.000000e+00> : vector<2x128xf32>
    %29 = tpu.matmul %27, %28, %cst_17 {dimension_numbers = #tpu.dot_dimension_numbers<[1], [0], [0], [1], [0, 0, 1, 1], [], []>} : vector<2x8xf32>, vector<8x128xf32>, vector<2x128xf32> -> vector<2x128xf32>
    %30 = vector.extract_strided_slice %29 {offsets = [0, 0], sizes = [1, 128], strides = [1, 1]} : vector<2x128xf32> to vector<1x128xf32>
    %31 = vector.broadcast %30 : vector<1x128xf32> to vector<4x128xf32>
    %32 = arith.mulf %2, %31 : vector<4x128xf32>
    %33 = vector.extract_strided_slice %29 {offsets = [1, 0], sizes = [1, 128], strides = [1, 1]} : vector<2x128xf32> to vector<1x128xf32>
    %34 = vector.broadcast %33 : vector<1x128xf32> to vector<4x128xf32>
    %35 = arith.addf %32, %34 : vector<4x128xf32>
    %cst_18 = arith.constant 0.000000e+00 : f32
    %36 = vector.broadcast %cst_18 : f32 to vector<4x128xf32>
    %37 = arith.cmpf ogt, %35, %36 : vector<4x128xf32>
    %cst_19 = arith.constant 2.000000e-01 : f32
    %38 = vector.broadcast %cst_19 : f32 to vector<4x128xf32>
    %39 = arith.mulf %38, %35 : vector<4x128xf32>
    %40 = arith.select %37, %35, %39 : vector<4x128xi1>, vector<4x128xf32>
    %c0_20 = arith.constant 0 : index
    %c0_21 = arith.constant 0 : index
    %41 = vector.load %arg7[%c0_20, %c0_21] : memref<128x256xf32, #tpu.memory_space<vmem>>, vector<128x256xf32>
    %cst_22 = arith.constant dense<0.000000e+00> : vector<4x256xf32>
    %42 = tpu.matmul %40, %41, %cst_22 {dimension_numbers = #tpu.dot_dimension_numbers<[1], [0], [0], [1], [0, 0, 1, 1], [], []>} : vector<4x128xf32>, vector<128x256xf32>, vector<4x256xf32> -> vector<4x256xf32>
    %cst_23 = arith.constant dense<0.000000e+00> : vector<256xf32>
    %43 = vector.multi_reduction <add>, %42, %cst_23 [0] : vector<4x256xf32> to vector<256xf32>
    %44 = vector.shape_cast %43 : vector<256xf32> to vector<1x256xf32>
    %45 = arith.mulf %42, %42 : vector<4x256xf32>
    %cst_24 = arith.constant dense<0.000000e+00> : vector<256xf32>
    %46 = vector.multi_reduction <add>, %45, %cst_24 [0] : vector<4x256xf32> to vector<256xf32>
    %47 = vector.shape_cast %46 : vector<256xf32> to vector<1x256xf32>
    %48 = tpu.concatenate %44, %47 in 0 : vector<1x256xf32>, vector<1x256xf32> -> vector<2x256xf32>
    %c0_25 = arith.constant 0 : index
    %c0_26 = arith.constant 0 : index
    %49 = vector.load %arg8[%c0_25, %c0_26] : memref<256x32xf32, #tpu.memory_space<vmem>>, vector<256x32xf32>
    %cst_27 = arith.constant dense<0.000000e+00> : vector<2x32xf32>
    %50 = tpu.matmul %48, %49, %cst_27 {dimension_numbers = #tpu.dot_dimension_numbers<[1], [0], [0], [1], [0, 0, 1, 1], [], []>} : vector<2x256xf32>, vector<256x32xf32>, vector<2x32xf32> -> vector<2x32xf32>
    %cst_28 = arith.constant 0.0416666679 : f32
    %51 = vector.broadcast %cst_28 : f32 to vector<2x32xf32>
    %52 = arith.mulf %50, %51 : vector<2x32xf32>
    %53 = vector.extract_strided_slice %52 {offsets = [0, 0], sizes = [1, 32], strides = [1, 1]} : vector<2x32xf32> to vector<1x32xf32>
    %54 = vector.extract_strided_slice %52 {offsets = [1, 0], sizes = [1, 32], strides = [1, 1]} : vector<2x32xf32> to vector<1x32xf32>
    %55 = arith.mulf %53, %53 : vector<1x32xf32>
    %56 = arith.subf %54, %55 : vector<1x32xf32>
    %cst_29 = arith.constant 0.000000e+00 : f32
    %57 = vector.broadcast %cst_29 : f32 to vector<1x32xf32>
    %58 = arith.maximumf %56, %57 : vector<1x32xf32>
    %cst_30 = arith.constant 9.99999974E-6 : f32
    %59 = vector.broadcast %cst_30 : f32 to vector<1x32xf32>
    %60 = arith.addf %58, %59 : vector<1x32xf32>
    %61 = math.rsqrt %60 : vector<1x32xf32>
    %c0_31 = arith.constant 0 : index
    %c0_32 = arith.constant 0 : index
    %62 = vector.load %arg10[%c0_31, %c0_32] : memref<1x32xf32, #tpu.memory_space<vmem>>, vector<1x32xf32>
    %63 = arith.mulf %61, %62 : vector<1x32xf32>
    %c0_33 = arith.constant 0 : index
    %c0_34 = arith.constant 0 : index
    %64 = vector.load %arg11[%c0_33, %c0_34] : memref<1x32xf32, #tpu.memory_space<vmem>>, vector<1x32xf32>
    %65 = arith.mulf %53, %63 : vector<1x32xf32>
    %66 = arith.subf %64, %65 : vector<1x32xf32>
    %67 = tpu.concatenate %63, %66 in 0 : vector<1x32xf32>, vector<1x32xf32> -> vector<2x32xf32>
    %c0_35 = arith.constant 0 : index
    %c0_36 = arith.constant 0 : index
    %68 = vector.load %arg9[%c0_35, %c0_36] : memref<32x256xf32, #tpu.memory_space<vmem>>, vector<32x256xf32>
    %cst_37 = arith.constant dense<0.000000e+00> : vector<2x256xf32>
    %69 = tpu.matmul %67, %68, %cst_37 {dimension_numbers = #tpu.dot_dimension_numbers<[1], [0], [0], [1], [0, 0, 1, 1], [], []>} : vector<2x32xf32>, vector<32x256xf32>, vector<2x256xf32> -> vector<2x256xf32>
    %70 = vector.extract_strided_slice %69 {offsets = [0, 0], sizes = [1, 256], strides = [1, 1]} : vector<2x256xf32> to vector<1x256xf32>
    %71 = vector.broadcast %70 : vector<1x256xf32> to vector<4x256xf32>
    %72 = arith.mulf %42, %71 : vector<4x256xf32>
    %73 = vector.extract_strided_slice %69 {offsets = [1, 0], sizes = [1, 256], strides = [1, 1]} : vector<2x256xf32> to vector<1x256xf32>
    %74 = vector.broadcast %73 : vector<1x256xf32> to vector<4x256xf32>
    %75 = arith.addf %72, %74 : vector<4x256xf32>
    %cst_38 = arith.constant 0.000000e+00 : f32
    %76 = vector.broadcast %cst_38 : f32 to vector<4x256xf32>
    %77 = arith.cmpf ogt, %75, %76 : vector<4x256xf32>
    %cst_39 = arith.constant 2.000000e-01 : f32
    %78 = vector.broadcast %cst_39 : f32 to vector<4x256xf32>
    %79 = arith.mulf %78, %75 : vector<4x256xf32>
    %80 = arith.select %77, %75, %79 : vector<4x256xi1>, vector<4x256xf32>
    %c0_40 = arith.constant 0 : index
    %c0_41 = arith.constant 0 : index
    %81 = vector.load %arg12[%c0_40, %c0_41] : memref<256x384xf32, #tpu.memory_space<vmem>>, vector<256x384xf32>
    %cst_42 = arith.constant dense<0.000000e+00> : vector<4x384xf32>
    %82 = tpu.matmul %80, %81, %cst_42 {dimension_numbers = #tpu.dot_dimension_numbers<[1], [0], [0], [1], [0, 0, 1, 1], [], []>} : vector<4x256xf32>, vector<256x384xf32>, vector<4x384xf32> -> vector<4x384xf32>
    %cst_43 = arith.constant dense<0.000000e+00> : vector<384xf32>
    %83 = vector.multi_reduction <add>, %82, %cst_43 [0] : vector<4x384xf32> to vector<384xf32>
    %84 = vector.shape_cast %83 : vector<384xf32> to vector<1x384xf32>
    %85 = arith.mulf %82, %82 : vector<4x384xf32>
    %cst_44 = arith.constant dense<0.000000e+00> : vector<384xf32>
    %86 = vector.multi_reduction <add>, %85, %cst_44 [0] : vector<4x384xf32> to vector<384xf32>
    %87 = vector.shape_cast %86 : vector<384xf32> to vector<1x384xf32>
    %88 = tpu.concatenate %84, %87 in 0 : vector<1x384xf32>, vector<1x384xf32> -> vector<2x384xf32>
    %c0_45 = arith.constant 0 : index
    %c0_46 = arith.constant 0 : index
    %89 = vector.load %arg13[%c0_45, %c0_46] : memref<384x128xf32, #tpu.memory_space<vmem>>, vector<384x128xf32>
    %cst_47 = arith.constant dense<0.000000e+00> : vector<2x128xf32>
    %90 = tpu.matmul %88, %89, %cst_47 {dimension_numbers = #tpu.dot_dimension_numbers<[1], [0], [0], [1], [0, 0, 1, 1], [], []>} : vector<2x384xf32>, vector<384x128xf32>, vector<2x128xf32> -> vector<2x128xf32>
    %cst_48 = arith.constant 0.0833333358 : f32
    %91 = vector.broadcast %cst_48 : f32 to vector<2x128xf32>
    %92 = arith.mulf %90, %91 : vector<2x128xf32>
    %93 = vector.extract_strided_slice %92 {offsets = [0, 0], sizes = [1, 128], strides = [1, 1]} : vector<2x128xf32> to vector<1x128xf32>
    %94 = vector.extract_strided_slice %92 {offsets = [1, 0], sizes = [1, 128], strides = [1, 1]} : vector<2x128xf32> to vector<1x128xf32>
    %95 = arith.mulf %93, %93 : vector<1x128xf32>
    %96 = arith.subf %94, %95 : vector<1x128xf32>
    %cst_49 = arith.constant 0.000000e+00 : f32
    %97 = vector.broadcast %cst_49 : f32 to vector<1x128xf32>
    %98 = arith.maximumf %96, %97 : vector<1x128xf32>
    %cst_50 = arith.constant 9.99999974E-6 : f32
    %99 = vector.broadcast %cst_50 : f32 to vector<1x128xf32>
    %100 = arith.addf %98, %99 : vector<1x128xf32>
    %101 = math.rsqrt %100 : vector<1x128xf32>
    %c0_51 = arith.constant 0 : index
    %c0_52 = arith.constant 0 : index
    %102 = vector.load %arg15[%c0_51, %c0_52] : memref<1x128xf32, #tpu.memory_space<vmem>>, vector<1x128xf32>
    %103 = arith.mulf %101, %102 : vector<1x128xf32>
    %c0_53 = arith.constant 0 : index
    %c0_54 = arith.constant 0 : index
    %104 = vector.load %arg16[%c0_53, %c0_54] : memref<1x128xf32, #tpu.memory_space<vmem>>, vector<1x128xf32>
    %105 = arith.mulf %93, %103 : vector<1x128xf32>
    %106 = arith.subf %104, %105 : vector<1x128xf32>
    %107 = tpu.concatenate %103, %106 in 0 : vector<1x128xf32>, vector<1x128xf32> -> vector<2x128xf32>
    %c0_55 = arith.constant 0 : index
    %c0_56 = arith.constant 0 : index
    %108 = vector.load %arg14[%c0_55, %c0_56] : memref<128x384xf32, #tpu.memory_space<vmem>>, vector<128x384xf32>
    %cst_57 = arith.constant dense<0.000000e+00> : vector<2x384xf32>
    %109 = tpu.matmul %107, %108, %cst_57 {dimension_numbers = #tpu.dot_dimension_numbers<[1], [0], [0], [1], [0, 0, 1, 1], [], []>} : vector<2x128xf32>, vector<128x384xf32>, vector<2x384xf32> -> vector<2x384xf32>
    %110 = vector.extract_strided_slice %109 {offsets = [0, 0], sizes = [1, 384], strides = [1, 1]} : vector<2x384xf32> to vector<1x384xf32>
    %111 = vector.broadcast %110 : vector<1x384xf32> to vector<4x384xf32>
    %112 = arith.mulf %82, %111 : vector<4x384xf32>
    %113 = vector.extract_strided_slice %109 {offsets = [1, 0], sizes = [1, 384], strides = [1, 1]} : vector<2x384xf32> to vector<1x384xf32>
    %114 = vector.broadcast %113 : vector<1x384xf32> to vector<4x384xf32>
    %115 = arith.addf %112, %114 : vector<4x384xf32>
    %cst_58 = arith.constant 0.000000e+00 : f32
    %116 = vector.broadcast %cst_58 : f32 to vector<4x384xf32>
    %117 = arith.cmpf ogt, %115, %116 : vector<4x384xf32>
    %cst_59 = arith.constant 2.000000e-01 : f32
    %118 = vector.broadcast %cst_59 : f32 to vector<4x384xf32>
    %119 = arith.mulf %118, %115 : vector<4x384xf32>
    %120 = arith.select %117, %115, %119 : vector<4x384xi1>, vector<4x384xf32>
    %c0_60 = arith.constant 0 : index
    %c0_61 = arith.constant 0 : index
    %121 = vector.load %arg17[%c0_60, %c0_61] : memref<384x32xf32, #tpu.memory_space<vmem>>, vector<384x32xf32>
    %cst_62 = arith.constant dense<0.000000e+00> : vector<4x32xf32>
    %122 = tpu.matmul %120, %121, %cst_62 {dimension_numbers = #tpu.dot_dimension_numbers<[1], [0], [0], [1], [0, 0, 1, 1], [], []>} : vector<4x384xf32>, vector<384x32xf32>, vector<4x32xf32> -> vector<4x32xf32>
    %123 = vector.extract_strided_slice %122 {offsets = [0, 0], sizes = [4, 16], strides = [1, 1]} : vector<4x32xf32> to vector<4x16xf32>
    %124 = vector.extract_strided_slice %122 {offsets = [0, 16], sizes = [4, 16], strides = [1, 1]} : vector<4x32xf32> to vector<4x16xf32>
    %c0_63 = arith.constant 0 : index
    %c0_64 = arith.constant 0 : index
    %125 = vector.load %arg1[%c0_63, %c0_64] : memref<4x16xf32, #tpu.memory_space<vmem>>, vector<4x16xf32>
    %cst_65 = arith.constant 5.000000e-01 : f32
    %126 = vector.broadcast %cst_65 : f32 to vector<4x16xf32>
    %127 = arith.mulf %124, %126 : vector<4x16xf32>
    %128 = math.exp %127 : vector<4x16xf32>
    %129 = arith.mulf %125, %128 : vector<4x16xf32>
    %130 = arith.addf %123, %129 : vector<4x16xf32>
    %131 = tpu.concatenate %130, %122 in 1 : vector<4x16xf32>, vector<4x32xf32> -> vector<4x48xf32>
    %c0_66 = arith.constant 0 : index
    %c0_67 = arith.constant 0 : index
    %132 = vector.load %arg18[%c0_66, %c0_67] : memref<4x48xf32, #tpu.memory_space<vmem>>, vector<4x48xf32>
    tpu.vector_store %arg18[%c0_66, %c0_67], %131 {strides = array<i32>} : memref<4x48xf32, #tpu.memory_space<vmem>>, vector<4x48xf32>,
    return
  }
}

</mosaic_0001>

<bundles_post_ra>
// kernel: _forward.1
= control target key start
LH: loop header
LB: loop body
LE: loop exit
PB: predicated region body
PF: predicated region fallthrough
CT: control target
= control target key end

     0   :  { %s3659_s0 = inlined_call_operand.vmem [shape: f32[4,128], index: 0, kind: input, shape index: {}]   ;;  %s3660_s1 = inlined_call_operand.vmem [shape: f32[4,16], index: 1, kind: input, shape index: {}]   ;;  %s3661_s2 = inlined_call_operand.hbm [shape: f32[128,128], index: 2, kind: input, shape index: {}]   ;;  %s3662_s3 = inlined_call_operand.vmem [shape: f32[128,8], index: 3, kind: input, shape index: {}]   ;;  %s3663_s4 = inlined_call_operand.vmem [shape: f32[8,128], index: 4, kind: input, shape index: {}]   ;;  %s3664_s5 = inlined_call_operand.vmem [shape: f32[1,8], index: 5, kind: input, shape index: {}]   ;;  %s3665_s6 = inlined_call_operand.vmem [shape: f32[1,8], index: 6, kind: input, shape index: {}]   ;;  %s3666_s7 = inlined_call_operand.vmem [shape: f32[128,256], index: 7, kind: input, shape index: {}]   ;;  %s3667_s8 = inlined_call_operand.vmem [shape: f32[256,32], index: 8, kind: input, shape index: {}]   ;;  %s3668_s9 = inlined_call_operand.hbm [shape: f32[32,256], index: 9, kind: input, shape index: {}]   ;;  %s3669_s10 = inlined_call_operand.vmem [shape: f32[1,32], index: 10, kind: input, shape index: {}]   ;;  %s3670_s11 = inlined_call_operand.vmem [shape: f32[1,32], index: 11, kind: input, shape index: {}]   ;;  %s3671_s12 = inlined_call_operand.vmem [shape: f32[256,384], index: 12, kind: input, shape index: {}]   ;;  %s3672_s13 = inlined_call_operand.hbm [shape: f32[384,128], index: 13, kind: input, shape index: {}]   ;;  %s3673_s14 = inlined_call_operand.hbm [shape: f32[128,384], index: 14, kind: input, shape index: {}]   ;;  %s3674_s15 = inlined_call_operand.vmem [shape: f32[1,128], index: 15, kind: input, shape index: {}]   ;;  %s3675_s16 = inlined_call_operand.vmem [shape: f32[1,128], index: 16, kind: input, shape index: {}]   ;;  %s3676_s17 = inlined_call_operand.vmem [shape: f32[384,32], index: 17, kind: input, shape index: {}]   ;;  %s3677_s18 = inlined_call_operand.vmem [shape: f32[4,48], index: 18, kind: output, shape index: {}]  }
   0x1   :  { %3680 = sst [smem:[#allocation12_spill]] %s3659_s0 }
   0x2   :  { %3681 = sst [smem:[#allocation13_spill]] %s3660_s1 }
   0x3   :  { %3682 = sst [smem:[#allocation14_spill]] %s3661_s2 }
   0x4   :  { %3683 = sst [smem:[#allocation15_spill]] %s3677_s18 }
   0x5   :  { %23 = vsyncpa [#allocation3], 0 }
   0x6   :  { %24 = vsyncpa [#allocation5], 0 }
   0x7   :  { %25 = vsyncpa [#allocation8], 0  ;;  %s2655_s27 = smov [#allocation4]   ;;  %s2561_s0 = scalar_lea.hbm %s3668_s9, 1024 }
   0x8   :  { %s59_s28 = sshll.u32 %s2655_s27, 4  ;;  %p2562_p0 = scmp.ne.s32.totalorder %s3668_s9, %s2561_s0  ;;  %s60_s28 = int_to_ptr.vmem [resolvable:$true] %s59_s28 }
   0x9   :  { %p2565_p1 = scmp.lt.u32.totalorder %s2561_s0, %s3668_s9 }
   0xb   :  { %p2567_p2 = pnand %p2565_p1, %p2562_p0 }
   0xd   :  { %2570 = shalt.err (!%p2567_p2)
}
   0xe   :  { %s2571_s22 = scalar_lea.vmem %s60_s28, 1024  ;;  %p2576_p4 = scmp.lt.s32.totalorder %s60_s28, %s60_s28 }
   0xf   :  { %p2572_p3 = scmp.ne.s32.totalorder %s60_s28, %s2571_s22  ;;  %p2577_p5 = scmp.lt.s32.totalorder %s2571_s22, %s2571_s22 }
  0x11   :  { %p2578_p6 = por %p2577_p5, %p2576_p4 }
  0x13   :  { %p2579_p7 = pnand %p2578_p6, %p2572_p3 }
  0x15   :  { %2582 = shalt.err (!%p2579_p7)
}
  0x16   :  { %s2656_s2 = smov 256   ;;  %s3679_s23 = smov 16  }
  0x17   :  { %65 = dma.hbm_to_vmem [thread:$0]  %s3668_s9, 1024, %s60_s28, [#allocation5], %s2656_s2, %s2656_s2, %s3679_s23  }
  0x18   :  { %s2658_s26 = smov [#allocation2]   ;;  %s3684_s0 = sld [smem:[#allocation14_spill]] }
  0x19   :  { %s35_s27 = sshll.u32 %s2658_s26, 4  ;;  %s36_s27 = int_to_ptr.vmem [resolvable:$true] %s35_s27 }
  0x1e   :  { %s2583_s19 = scalar_lea.hbm %s3684_s0, 2048 }
  0x1f   :  { %p2584_p8 = scmp.ne.s32.totalorder %s3684_s0, %s2583_s19  ;;  %p2587_p9 = scmp.lt.u32.totalorder %s2583_s19, %s3684_s0 }
  0x21   :  { %p2589_p10 = pnand %p2587_p9, %p2584_p8 }
  0x23   :  { %2592 = shalt.err (!%p2589_p10)
}
  0x24   :  { %s2593_s18 = scalar_lea.vmem %s36_s27, 2048  ;;  %p2598_p12 = scmp.lt.s32.totalorder %s36_s27, %s36_s27 }
  0x25   :  { %p2594_p11 = scmp.ne.s32.totalorder %s36_s27, %s2593_s18  ;;  %p2599_p13 = scmp.lt.s32.totalorder %s2593_s18, %s2593_s18 }
  0x27   :  { %p2600_p0 = por %p2599_p13, %p2598_p12 }
  0x29   :  { %p2601_p1 = pnand %p2600_p0, %p2594_p11 }
  0x2b   :  { %2604 = shalt.err (!%p2601_p1)
}
  0x2c   :  { %s2659_s9 = smov 128   ;;  %s2660_s28 = smov 8  }
  0x2d   :  { %41 = dma.hbm_to_vmem [thread:$0]  %s3684_s0, 2048, %s36_s27, [#allocation3], %s2659_s9, %s2659_s9, %s2660_s28  }
  0x2e   :  { %s2661_s25 = smov [#allocation6]   ;;  %s2662_s29 = smov [#allocation7]  }
  0x2f   :  { %s77_s26 = sshll.u32 %s2661_s25, 4  ;;  %s89_s30 = sshll.u32 %s2662_s29, 4  ;;  %s78_s26 = int_to_ptr.vmem [resolvable:$true] %s77_s26  ;;  %s2789_s30 = int_to_ptr.vmem [resolvable:$true] %s89_s30 }
  0x30   :  { %s2605_s18 = scalar_lea.hbm %s3672_s13, 6144 }
  0x31   :  { %p2606_p2 = scmp.ne.s32.totalorder %s3672_s13, %s2605_s18  ;;  %p2609_p3 = scmp.lt.u32.totalorder %s2605_s18, %s3672_s13 }
  0x33   :  { %p2611_p4 = pnand %p2609_p3, %p2606_p2 }
  0x35   :  { %2614 = shalt.err (!%p2611_p4)
}
  0x36   :  { %s2615_s27 = scalar_lea.vmem %s78_s26, 6144  ;;  %p2620_p6 = scmp.lt.s32.totalorder %s78_s26, %s78_s26 }
  0x37   :  { %p2616_p5 = scmp.ne.s32.totalorder %s78_s26, %s2615_s27  ;;  %p2621_p7 = scmp.lt.s32.totalorder %s2615_s27, %s2615_s27 }
  0x39   :  { %p2622_p8 = por %p2621_p7, %p2620_p6 }
  0x3b   :  { %p2623_p9 = pnand %p2622_p8, %p2616_p5 }
  0x3d   :  { %2626 = shalt.err (!%p2623_p9)
}
  0x3e   :  { %83 = dma.hbm_to_vmem [thread:$0]  %s3672_s13, 6144, %s78_s26, [#allocation5], %s2659_s9, %s2659_s9, %s2660_s28  }
  0x3f   :  { %s2627_s29 = scalar_lea.hbm %s3673_s14, 6144 }
  0x40   :  { %p2628_p10 = scmp.ne.s32.totalorder %s3673_s14, %s2627_s29  ;;  %p2631_p11 = scmp.lt.u32.totalorder %s2627_s29, %s3673_s14 }
  0x42   :  { %p2633_p12 = pnand %p2631_p11, %p2628_p10 }
  0x44   :  { %2636 = shalt.err (!%p2633_p12)
}
  0x45   :  { %s2637_s20 = scalar_lea.vmem %s2789_s30, 6144  ;;  %p2642_p0 = scmp.lt.s32.totalorder %s2789_s30, %s2789_s30 }
  0x46   :  { %p2638_p13 = scmp.ne.s32.totalorder %s2789_s30, %s2637_s20  ;;  %p2643_p1 = scmp.lt.s32.totalorder %s2637_s20, %s2637_s20 }
  0x48   :  { %p2644_p2 = por %p2643_p1, %p2642_p0 }
  0x4a   :  { %p2645_p3 = pnand %p2644_p2, %p2638_p13 }
  0x4c   :  { %2648 = shalt.err (!%p2645_p3)
}
  0x4d   :  { %s2663_s13 = smov 384   ;;  %s2664_s9 = smov 24  }
  0x4e   :  { %95 = dma.hbm_to_vmem [thread:$0]  %s3673_s14, 6144, %s2789_s30, [#allocation8], %s2663_s13, %s2663_s13, %s2664_s9  }
  0x4f   :  { %2649 = dma.done.wait [#allocation3], 2048  }
  0x50   :  { %2650 = vsyncadd [#allocation3], 4294965248 }
  0x51   :  { %2651 = dma.done.wait [#allocation5], 7168  }
  0x52   :  { %2652 = vsyncadd [#allocation5], 4294960128 }
  0x53   :  { %2653 = dma.done.wait [#allocation8], 6144  }
  0x54   :  { %2654 = vsyncadd [#allocation8], 4294961152  ;;  %v2665_v0 = vmov 0.0|0.0   ;;  %vm2666_vm0 = vmmov 0   ;;  %v2667_v1 = vmov 0.0   ;;  %v115_v2 = vld [vmem:[#allocation2] sm:$0xff] }
  0x55   :  { %2155 = vmatprep.subr.bf16.mxu0 %v2665_v0  ;;  %2007 = vmatprep.mubr.msk.f32.mxu0 %vm2666_vm0, %v2667_v1  ;;  %v116_v3 = vld [vmem:[#allocation2 + $0x8] sm:$0xff]  ;;  %v117_v4 = vld [vmem:[#allocation2 + $0x10] sm:$0xff]  ;;  %v118_v6 = vld [vmem:[#allocation2 + $0x18] sm:$0xff]  ;;  %s3685_s26 = sld [smem:[#allocation12_spill]]  ;;  %vm201_vm1 = vcmask 1043456   ;;  %vm217_vm2 = vcmask 1040384  }
  0x56   :  { %2179 = vmatprep.subr.bf16.mxu1 %v2665_v0  ;;  %2042 = vmatprep.mubr.msk.f32.mxu1 %vm2666_vm0, %v2667_v1  ;;  %v2156_v5 = vpack.c.bf16 %v116_v3, %v115_v2  ;;  %v2159_v7 = vpack.c.bf16 %v118_v6, %v117_v4  ;;  %v119_v8 = vld [vmem:[#allocation2 + $0x20] sm:$0xff]  ;;  %v120_v9 = vld [vmem:[#allocation2 + $0x28] sm:$0xff]  ;;  %v221_v12 = vld [vmem:[%s3662_s3 + $0x10] sm:$0xff]  ;;  %vm336_vm3 = vcmask 64512   ;;  %vm698_vm5 = vcmask 261120   ;;  %s3686_s25 = smov 16  }
  0x57   :  { %v219_v10 = vld [vmem:[%s3662_s3] sm:$0xff]  ;;  %v220_v11 = vld [vmem:[%s3662_s3 + $0x8] sm:$0xff]  ;;  %v222_v13 = vld [vmem:[%s3662_s3 + $0x18] sm:$0xff]  ;;  %v2162_v14 = vpack.c.bf16 %v120_v9, %v119_v8  ;;  %vm1732_vm11 = vcmask 130048   ;;  %vm1734_vm12 = vcmask 388096   ;;  %s3688_s23 = sld [smem:[#allocation15_spill]] }
  0x58   :  { %2157 = vmatpush3.bf16.msra.mxu0 %v2156_v5  ;;  %v2180_v15 = vpack.c.bf16 %v220_v11, %v219_v10  ;;  %v121_v16 = vld [vmem:[#allocation2 + $0x30] sm:$0xff]  ;;  %v122_v17 = vld [vmem:[#allocation2 + $0x38] sm:$0xff]  ;;  %v2183_v18 = vpack.c.bf16 %v222_v13, %v221_v12  ;;  %v223_v19 = vld [vmem:[%s3662_s3 + $0x20] sm:$0xff] }
  0x59   :  { %2158 = vmatprep.subr.bf16.mxu0 %v2665_v0  ;;  %v224_v20 = vld [vmem:[%s3662_s3 + $0x28] sm:$0xff]  ;;  %v2165_v21 = vpack.c.bf16 %v122_v17, %v121_v16  ;;  %v123_v22 = vld [vmem:[#allocation2 + $0x40] sm:$0xff]  ;;  %v225_v25 = vld [vmem:[%s3662_s3 + $0x30] sm:$0xff] }
  0x5a   :  { %2181 = vmatpush3.bf16.msra.mxu1 %v2180_v15  ;;  %v124_v23 = vld [vmem:[#allocation2 + $0x48] sm:$0xff]  ;;  %v2186_v24 = vpack.c.bf16 %v224_v20, %v223_v19  ;;  %v226_v26 = vld [vmem:[%s3662_s3 + $0x38] sm:$0xff]  ;;  %v125_v28 = vld [vmem:[#allocation2 + $0x50] sm:$0xff]  ;;  %v329_v19 = vlaneseq }
  0x5b   :  { %2182 = vmatprep.subr.bf16.mxu1 %v2665_v0  ;;  %v2168_v27 = vpack.c.bf16 %v124_v23, %v123_v22  ;;  %v126_v29 = vld [vmem:[#allocation2 + $0x58] sm:$0xff]  ;;  %v2189_v30 = vpack.c.bf16 %v226_v26, %v225_v25  ;;  %v127_v32 = vld [vmem:[#allocation2 + $0x60] sm:$0xff]  ;;  %v128_v33 = vld [vmem:[#allocation2 + $0x68] sm:$0xff] }
  0x5c   :  { %2160 = vmatpush3.bf16.msra.mxu0 %v2159_v7  ;;  %v2171_v31 = vpack.c.bf16 %v126_v29, %v125_v28  ;;  %v2174_v34 = vpack.c.bf16 %v128_v33, %v127_v32  ;;  %v129_v35 = vld [vmem:[#allocation2 + $0x70] sm:$0xff]  ;;  %v130_v36 = vld [vmem:[#allocation2 + $0x78] sm:$0xff]  ;;  %v114_v38 = vld [vmem:[%s3685_s26] sm:$0xf]  ;;  %v2914_v23 = vshrl.u32 %v329_v19, 7 }
  0x5d   :  { %2161 = vmatprep.subr.bf16.mxu0 %v2665_v0  ;;  %v2177_v37 = vpack.c.bf16 %v130_v36, %v129_v35  ;;  %v227_v39 = vld [vmem:[%s3662_s3 + $0x40] sm:$0xff]  ;;  %v228_v40 = vld [vmem:[%s3662_s3 + $0x48] sm:$0xff]  ;;  %v229_v42 = vld [vmem:[%s3662_s3 + $0x50] sm:$0xff] }
  0x5e   :  { %2184 = vmatpush3.bf16.msra.mxu1 %v2183_v18  ;;  %v2192_v41 = vpack.c.bf16 %v228_v40, %v227_v39  ;;  %v230_v43 = vld [vmem:[%s3662_s3 + $0x58] sm:$0xff]  ;;  %v231_v45 = vld [vmem:[%s3662_s3 + $0x60] sm:$0xff]  ;;  %v232_v46 = vld [vmem:[%s3662_s3 + $0x68] sm:$0xff] }
  0x5f   :  { %2185 = vmatprep.subr.bf16.mxu1 %v2665_v0  ;;  %v2195_v44 = vpack.c.bf16 %v230_v43, %v229_v42  ;;  %v2198_v47 = vpack.c.bf16 %v232_v46, %v231_v45  ;;  %v233_v48 = vld [vmem:[%s3662_s3 + $0x70] sm:$0xff]  ;;  %v234_v49 = vld [vmem:[%s3662_s3 + $0x78] sm:$0xff]  ;;  %v335_v7 = vld [vmem:[%s3663_s4] sm:$0xff] }
  0x60   :  { %2163 = vmatpush3.bf16.msra.mxu0 %v2162_v14  ;;  %v2201_v50 = vpack.c.bf16 %v234_v49, %v233_v48  ;;  %v424_v8 = vld [vmem:[%s3666_s7 + $0x8] sm:$0xff]  ;;  %v426_v9 = vld [vmem:[%s3666_s7 + $0x18] sm:$0xff]  ;;  %v1743_v20 = vld [vmem:[%s3664_s5] ss:$0 sm:$0xff] }
  0x61   :  { %2164 = vmatprep.subr.bf16.mxu0 %v2665_v0  ;;  %v2203_v10 = vpack.c.bf16 %v426_v9, %v424_v8  ;;  %v322_v25 = vld [vmem:[%s3665_s6] sm:$0x1]  ;;  %v425_v29 = vld [vmem:[%s3666_s7 + $0x10] sm:$0xff]  ;;  %v430_v32 = vld [vmem:[%s3666_s7 + $0x38] sm:$0xff] }
  0x62   :  { %2187 = vmatpush3.bf16.msra.mxu1 %v2186_v24  ;;  %v423_v28 = vld [vmem:[%s3666_s7] sm:$0xff]  ;;  %v432_v39 = vld [vmem:[%s3666_s7 + $0x48] sm:$0xff]  ;;  %v434_v40 = vld [vmem:[%s3666_s7 + $0x58] sm:$0xff] }
  0x63   :  { %2188 = vmatprep.subr.bf16.mxu1 %v2665_v0  ;;  %v427_v36 = vld [vmem:[%s3666_s7 + $0x20] sm:$0xff]  ;;  %v2211_v42 = vpack.c.bf16 %v434_v40, %v432_v39  ;;  %v436_v45 = vld [vmem:[%s3666_s7 + $0x68] sm:$0xff]  ;;  %v438_v46 = vld [vmem:[%s3666_s7 + $0x78] sm:$0xff] }
  0x64   :  { %2166 = vmatpush3.bf16.msra.mxu0 %v2165_v21  ;;  %v431_v43 = vld [vmem:[%s3666_s7 + $0x40] sm:$0xff]  ;;  %v2215_v48 = vpack.c.bf16 %v438_v46, %v436_v45  ;;  %v452_v9 = vld [vmem:[%s3666_s7 + $0xe8] sm:$0xff] }
  0x65   :  { %2167 = vmatprep.subr.bf16.mxu0 %v2665_v0  ;;  %v435_v49 = vld [vmem:[%s3666_s7 + $0x60] sm:$0xff]  ;;  %v559_v19 = vld [vmem:[%s3667_s8 + $0x8] sm:$0xff] }
  0x66   :  { %2190 = vmatpush3.bf16.msra.mxu1 %v2189_v30 }
  0x67   :  { %2191 = vmatprep.subr.bf16.mxu1 %v2665_v0 }
  0x68   :  { %2169 = vmatpush3.bf16.msra.mxu0 %v2168_v27  ;;  %v2920_v27 = vsub.s32 0, %v2914_v23 }
  0x69   :  { %2170 = vmatprep.subr.bf16.mxu0 %v2665_v0 }
  0x6a   :  { %2193 = vmatpush3.bf16.msra.mxu1 %v2192_v41 }
  0x6b   :  { %2194 = vmatprep.subr.bf16.mxu1 %v2665_v0 }
  0x6c   :  { %2172 = vmatpush3.bf16.msra.mxu0 %v2171_v31  ;;  %v428_v31 = vld [vmem:[%s3666_s7 + $0x28] sm:$0xff] }
  0x6d   :  { %2173 = vmatprep.subr.bf16.mxu0 %v2665_v0  ;;  %v2207_v35 = vpack.c.bf16 %v430_v32, %v428_v31  ;;  %v562_v32 = vld [vmem:[%s3667_s8 + $0x20] sm:$0xff] }
  0x6e   :  { %2196 = vmatpush3.bf16.msra.mxu1 %v2195_v44  ;;  %v433_v44 = vld [vmem:[%s3666_s7 + $0x50] sm:$0xff] }
  0x6f   :  { %2197 = vmatprep.subr.bf16.mxu1 %v2665_v0 }
  0x70   :  { %2175 = vmatpush3.bf16.msra.mxu0 %v2174_v34  ;;  %v2205_v34 = vpack.c.bf16 %v425_v29, %v423_v28  ;;  %v578_v28 = vld [vmem:[%s3667_s8 + $0xa0] sm:$0xff]  ;;  %v579_v29 = vld [vmem:[%s3667_s8 + $0xa8] sm:$0xff] }
  0x71   :  { %2176 = vmatprep.subr.bf16.mxu0 %v2665_v0  ;;  %v2243_v31 = vpack.c.bf16 %v579_v29, %v578_v28 }
  0x72   :  { %2199 = vmatpush3.bf16.msra.mxu1 %v2198_v47  ;;  %v2213_v47 = vpack.c.bf16 %v433_v44, %v431_v43 }
  0x73   :  { %2200 = vmatprep.subr.bf16.mxu1 %v2665_v0 }
  0x74   :  { %2178 = vmatpush3.bf16.msra.mxu0 %v2177_v37  ;;  %v429_v37 = vld [vmem:[%s3666_s7 + $0x30] sm:$0xff] }
  0x75   :  { %v2209_v41 = vpack.c.bf16 %v429_v37, %v427_v36 }
  0x76   :  { %2202 = vmatpush3.bf16.msra.mxu1 %v2201_v50  ;;  %v437_v50 = vld [vmem:[%s3666_s7 + $0x70] sm:$0xff] }
  0x77   :  { %2008 = vmatmul.mubr.f32.vlgmr.msra.gmra.mrb[0].mxu0 %v114_v38  ;;  %2045 = vmatprep.subr.mxu1 %v2667_v1 }
 0x14a   :  { %v2892_v51 = vpop.f32.mrb[0].mxu0 }
 0x14b   :  { %v202_v52 = vsel %vm201_vm1, %v2892_v51, 0.0  ;;  %v209_v53 = vmul.f32 %v2892_v51, %v2892_v51  ;;  %v2009_v54 = vpop.f32.mrb[1].mxu0 }
 0x14c   :  { %v203_v55 = vrot.slane %v202_v52, 4  ;;  %v2217_v54 = vpack.c.bf16 %v437_v50, %v435_v49  ;;  %v583_v49 = vld [vmem:[%s3667_s8 + $0xc8] sm:$0xff] }
 0x14d   :  { %v210_v56 = vsel %vm201_vm1, %v209_v53, 0.0  ;;  %v442_v53 = vld [vmem:[%s3666_s7 + $0x98] sm:$0xff] }
 0x14e   :  { %v204_v57 = vadd.f32 %v203_v55, %v202_v52  ;;  %v211_v58 = vrot.slane %v210_v56, 4  ;;  %v440_v52 = vld [vmem:[%s3666_s7 + $0x88] sm:$0xff] }
 0x14f   :  { %v2219_v55 = vpack.c.bf16 %v442_v53, %v440_v52  ;;  %v566_v52 = vld [vmem:[%s3667_s8 + $0x40] sm:$0xff]  ;;  %v567_v53 = vld [vmem:[%s3667_s8 + $0x48] sm:$0xff] }
 0x150   :  { %v205_v59 = vrot.slane %v204_v57, 2  ;;  %v212_v60 = vadd.f32 %v211_v58, %v210_v56  ;;  %v439_v56 = vld [vmem:[%s3666_s7 + $0x80] sm:$0xff]  ;;  %v444_v58 = vld [vmem:[%s3666_s7 + $0xa8] sm:$0xff] }
 0x152   :  { %v206_v61 = vadd.f32 %v205_v59, %v204_v57  ;;  %v213_v62 = vrot.slane %v212_v60, 2  ;;  %v441_v57 = vld [vmem:[%s3666_s7 + $0x90] sm:$0xff]  ;;  %v446_v59 = vld [vmem:[%s3666_s7 + $0xb8] sm:$0xff] }
 0x154   :  { %v207_v63 = vrot.slane %v206_v61, 1  ;;  %v214_v2 = vadd.f32 %v213_v62, %v212_v60  ;;  %v2221_v60 = vpack.c.bf16 %v441_v57, %v439_v56  ;;  %v443_v62 = vld [vmem:[%s3666_s7 + $0xa0] sm:$0xff]  ;;  %v585_v56 = vld [vmem:[%s3667_s8 + $0xd8] sm:$0xff] }
 0x156   :  { %v215_v3 = vrot.slane %v214_v2, 1  ;;  %v208_v4 = vadd.f32 %v207_v63, %v206_v61  ;;  %v2223_v61 = vpack.c.bf16 %v446_v59, %v444_v58  ;;  %v445_v63 = vld [vmem:[%s3666_s7 + $0xb0] sm:$0xff]  ;;  %v569_v59 = vld [vmem:[%s3667_s8 + $0x58] sm:$0xff] }
 0x157   :  { %v568_v58 = vld [vmem:[%s3667_s8 + $0x50] sm:$0xff] }
 0x158   :  { %v216_v5 = vadd.f32 %v215_v3, %v214_v2  ;;  %v2225_v2 = vpack.c.bf16 %v445_v63, %v443_v62  ;;  %v448_v3 = vld [vmem:[%s3666_s7 + $0xc8] sm:$0xff] }
 0x159   :  { %v587_v62 = vld [vmem:[%s3667_s8 + $0xe8] sm:$0xff] }
 0x15a   :  { %v218_v6 = vsel %vm217_vm2, %v208_v4, %v216_v5  ;;  %v450_v4 = vld [vmem:[%s3666_s7 + $0xd8] sm:$0xff] }
 0x15b   :  { %2043 = vmatmul.mubr.f32.vlgmr.msra.gmra.mrb[0].mxu1 %v218_v6  ;;  %v2227_v5 = vpack.c.bf16 %v450_v4, %v448_v3  ;;  %v447_v6 = vld [vmem:[%s3666_s7 + $0xc0] sm:$0xff]  ;;  %v571_v3 = vld [vmem:[%s3667_s8 + $0x68] sm:$0xff] }
 0x15c   :  { %2047 = vmatprep.mubr.msk.f32.mxu1 %vm2666_vm0, %v2667_v1  ;;  %2046 = vmatpush3.msra.mxu1 %v335_v7  ;;  %v449_v7 = vld [vmem:[%s3666_s7 + $0xd0] sm:$0xff] }
 0x15d   :  { %2204 = vmatprep.subr.bf16.mxu1 %v2203_v10  ;;  %v2229_v8 = vpack.c.bf16 %v449_v7, %v447_v6  ;;  %v454_v10 = vld [vmem:[%s3666_s7 + $0xf8] sm:$0xff]  ;;  %v572_v7 = vld [vmem:[%s3667_s8 + $0x70] sm:$0xff] }
 0x15e   :  { %v589_v6 = vld [vmem:[%s3667_s8 + $0xf8] sm:$0xff] }
 0x22e   :  { %v301_v11 = vpop.f32.mrb[0].mxu1 }
 0x22f   :  { %v305_v12 = vmul.f32 0.020833334, %v301_v11  ;;  %v2044_v13 = vpop.f32.mrb[1].mxu1  ;;  %v2231_v11 = vpack.c.bf16 %v454_v10, %v452_v9  ;;  %v573_v9 = vld [vmem:[%s3667_s8 + $0x78] sm:$0xff] }
 0x230   :  { %v453_v13 = vld [vmem:[%s3666_s7 + $0xf0] sm:$0xff]  ;;  %v2265_v10 = vpack.c.bf16 %v573_v9, %v572_v7  ;;  %v808_v7 = vld [vmem:[%s3671_s12 + $0x48] sm:$0xff]  ;;  %v815_v9 = vld [vmem:[%s3671_s12 + $0x80] sm:$0xff] }
 0x231   :  { %v306_v14 = vmul.f32 %v305_v12, %v305_v12 }
 0x233   :  { %v308_v15 = vrot.slane %v306_v14, 7 }
 0x235   :  { %v310_v16 = vsub.f32 %v305_v12, %v308_v15  ;;  %v574_v15 = vld [vmem:[%s3667_s8 + $0x80] sm:$0xff] }
 0x237   :  { %v311_v17 = vmax.f32 %v310_v16, 0.0  ;;  %v575_v16 = vld [vmem:[%s3667_s8 + $0x88] sm:$0xff] }
 0x239   :  { %v312_v18 = vadd.f32 1e-05, %v311_v17  ;;  %v558_v17 = vld [vmem:[%s3667_s8] sm:$0xff] }
 0x23b   :  { %2553 = vrsqrt.f32 %v312_v18  ;;  %v2235_v18 = vpack.c.bf16 %v575_v16, %v574_v15 }
 0x23d   :  { %2236 = vmatprep.subr.bf16.mxu0 %v2235_v18 }
 0x245   :  { %v2554_v21 = vpop.eup %2553 }
 0x246   :  { %v321_v22 = vmul.f32 %v2554_v21, %v1743_v20  ;;  %v576_v20 = vld [vmem:[%s3667_s8 + $0x90] sm:$0xff]  ;;  %v577_v21 = vld [vmem:[%s3667_s8 + $0x98] sm:$0xff] }
 0x248   :  { %v324_v24 = vrot.slane %v321_v22, 1  ;;  %v2237_v22 = vpack.c.bf16 %v559_v19, %v558_v17 }
 0x24a   :  { %v326_v26 = vmul.f32 %v324_v24, %v305_v12  ;;  %v451_v12 = vld [vmem:[%s3666_s7 + $0xe0] sm:$0xff]  ;;  %2238 = vmatpush3.bf16.msra.mxu0 %v2237_v22 }
 0x24b   :  { %v2233_v14 = vpack.c.bf16 %v453_v13, %v451_v12 }
 0x24c   :  { %v327_v30 = vsub.f32 %v322_v25, %v326_v26  ;;  %v560_v25 = vld [vmem:[%s3667_s8 + $0x10] sm:$0xff]  ;;  %v561_v26 = vld [vmem:[%s3667_s8 + $0x18] sm:$0xff] }
 0x24e   :  { %v332_v33 = vrot.slane %v327_v30, %v2920_v27  ;;  %v2241_v30 = vpack.c.bf16 %v561_v26, %v560_v25 }
 0x250   :  { %v334_v38 = vsel %vm217_vm2, %v324_v24, %v332_v33  ;;  %v2239_v24 = vpack.c.bf16 %v577_v21, %v576_v20  ;;  %v563_v33 = vld [vmem:[%s3667_s8 + $0x28] sm:$0xff] }
 0x251   :  { %2048 = vmatmul.mubr.msk.f32.vlgmr.msra.gmra.mrb[2].mxu1 %vm336_vm3, %v334_v38  ;;  %v2245_v36 = vpack.c.bf16 %v563_v33, %v562_v32  ;;  %v3058_v38 = vsub.s32 1, %v2914_v23  ;;  %v564_v23 = vld [vmem:[%s3667_s8 + $0x30] sm:$0xff] }
 0x252   :  { %2206 = vmatpush1.bf16.msra.mxu1 %v2205_v34  ;;  %519 = vmatprep.mubr.f32.mxu1 %v2667_v1  ;;  %v580_v34 = vld [vmem:[%s3667_s8 + $0xb0] sm:$0xff] }
 0x253   :  { %2208 = vmatprep.subr.bf16.mxu1 %v2207_v35  ;;  %2240 = vmatprep.subr.bf16.mxu0 %v2239_v24  ;;  %v581_v35 = vld [vmem:[%s3667_s8 + $0xb8] sm:$0xff] }
 0x254   :  { %2242 = vmatpush3.bf16.msra.mxu0 %v2241_v30  ;;  %v2247_v37 = vpack.c.bf16 %v581_v35, %v580_v34 }
 0x255   :  { %2244 = vmatprep.subr.bf16.mxu0 %v2243_v31 }
 0x256   :  { %2210 = vmatpush1.bf16.msra.mxu1 %v2209_v41 }
 0x257   :  { %2212 = vmatprep.subr.bf16.mxu1 %v2211_v42 }
 0x258   :  { %2246 = vmatpush3.bf16.msra.mxu0 %v2245_v36 }
 0x259   :  { %2248 = vmatprep.subr.bf16.mxu0 %v2247_v37 }
 0x25a   :  { %2214 = vmatpush1.bf16.msra.mxu1 %v2213_v47  ;;  %v565_v47 = vld [vmem:[%s3667_s8 + $0x38] sm:$0xff] }
 0x25b   :  { %2216 = vmatprep.subr.bf16.mxu1 %v2215_v48  ;;  %v2249_v48 = vpack.c.bf16 %v565_v47, %v564_v23  ;;  %v691_v47 = vld [vmem:[#allocation4 + $0x8] sm:$0xff] }
 0x25d   :  { %2250 = vmatpush3.bf16.msra.mxu0 %v2249_v48  ;;  %v693_v48 = vld [vmem:[#allocation4 + $0x18] sm:$0xff] }
 0x25e   :  { %2218 = vmatpush1.bf16.msra.mxu1 %v2217_v54  ;;  %v2253_v54 = vpack.c.bf16 %v567_v53, %v566_v52  ;;  %v695_v53 = vld [vmem:[#allocation4 + $0x28] sm:$0xff] }
 0x25f   :  { %2220 = vmatprep.subr.bf16.mxu1 %v2219_v55  ;;  %v584_v55 = vld [vmem:[%s3667_s8 + $0xd0] sm:$0xff] }
 0x260   :  { %v2255_v57 = vpack.c.bf16 %v585_v56, %v584_v55  ;;  %v694_v56 = vld [vmem:[#allocation4 + $0x20] sm:$0xff] }
 0x262   :  { %2222 = vmatpush1.bf16.msra.mxu1 %v2221_v60  ;;  %v2257_v60 = vpack.c.bf16 %v569_v59, %v568_v58  ;;  %v800_v59 = vld [vmem:[%s3671_s12 + $0x8] sm:$0xff] }
 0x263   :  { %2224 = vmatprep.subr.bf16.mxu1 %v2223_v61  ;;  %v586_v61 = vld [vmem:[%s3667_s8 + $0xe0] sm:$0xff] }
 0x264   :  { %v2259_v63 = vpack.c.bf16 %v587_v62, %v586_v61  ;;  %v799_v61 = vld [vmem:[%s3671_s12] sm:$0xff] }
 0x266   :  { %2226 = vmatpush1.bf16.msra.mxu1 %v2225_v2  ;;  %v570_v2 = vld [vmem:[%s3667_s8 + $0x60] sm:$0xff] }
 0x267   :  { %2228 = vmatprep.subr.bf16.mxu1 %v2227_v5  ;;  %v2261_v4 = vpack.c.bf16 %v571_v3, %v570_v2  ;;  %v588_v5 = vld [vmem:[%s3667_s8 + $0xf0] sm:$0xff]  ;;  %v806_v2 = vld [vmem:[%s3671_s12 + $0x38] sm:$0xff] }
 0x268   :  { %v809_v3 = vld [vmem:[%s3671_s12 + $0x50] sm:$0xff] }
 0x26a   :  { %2230 = vmatpush1.bf16.msra.mxu1 %v2229_v8  ;;  %v2263_v8 = vpack.c.bf16 %v589_v6, %v588_v5  ;;  %v2279_v5 = vpack.c.bf16 %v809_v3, %v806_v2  ;;  %v805_v6 = vld [vmem:[%s3671_s12 + $0x30] sm:$0xff]  ;;  %v863_v2 = vld [vmem:[%s3671_s12 + $0x200] sm:$0xff] }
 0x26b   :  { %2232 = vmatprep.subr.bf16.mxu1 %v2231_v11 }
 0x26e   :  { %2234 = vmatpush1.bf16.msra.mxu1 %v2233_v14 }
 0x324   :  { %v406_v39 = vpop.f32.mrb[2].mxu1 }
 0x325   :  { %v413_v40 = vrot.slane %v406_v39, %v2920_v27  ;;  %v2049_v41 = vpop.f32.mrb[3].mxu1  ;;  %v418_v43 = vrot.slane %v406_v39, %v3058_v38 }
 0x327   :  { %v414_v42 = vmul.f32 %v413_v40, %v2892_v51  ;;  %v582_v51 = vld [vmem:[%s3667_s8 + $0xc0] sm:$0xff]  ;;  %s3687_s8 = sld [smem:[#allocation13_spill]] }
 0x328   :  { %v2251_v50 = vpack.c.bf16 %v583_v49, %v582_v51  ;;  %v2267_v51 = vpack.c.bf16 %v693_v48, %v691_v47  ;;  %v690_v49 = vld [vmem:[#allocation4] sm:$0xff] }
 0x329   :  { %v419_v44 = vadd.f32 %v418_v43, %v414_v42 }
 0x32a   :  { %2252 = vmatprep.subr.bf16.mxu0 %v2251_v50  ;;  %v692_v50 = vld [vmem:[#allocation4 + $0x10] sm:$0xff]  ;;  %2268 = vmatprep.subr.bf16.mxu1 %v2267_v51 }
 0x32b   :  { %vm420_vm4 = vcmp.gt.f32.partialorder %v419_v44, 0.0  ;;  %v421_v45 = vmul.f32 0.2, %v419_v44  ;;  %2254 = vmatpush3.bf16.msra.mxu0 %v2253_v54  ;;  %v2269_v52 = vpack.c.bf16 %v692_v50, %v690_v49  ;;  %v697_v54 = vld [vmem:[#allocation4 + $0x38] sm:$0xff]  ;;  %v841_v51 = vld [vmem:[%s3671_s12 + $0x150] sm:$0xff]  ;;  %v844_v49 = vld [vmem:[%s3671_s12 + $0x168] sm:$0xff] }
 0x32c   :  { %2256 = vmatprep.subr.bf16.mxu0 %v2255_v57  ;;  %v2271_v55 = vpack.c.bf16 %v697_v54, %v695_v53  ;;  %v696_v57 = vld [vmem:[#allocation4 + $0x30] sm:$0xff]  ;;  %v848_v50 = vld [vmem:[%s3671_s12 + $0x188] sm:$0xff]  ;;  %v2305_v53 = vpack.c.bf16 %v844_v49, %v841_v51 }
 0x32d   :  { %v422_v46 = vsel %vm420_vm4, %v419_v44, %v421_v45  ;;  %v2273_v58 = vpack.c.bf16 %v696_v57, %v694_v56  ;;  %v850_v56 = vld [vmem:[%s3671_s12 + $0x198] sm:$0xff]  ;;  %v861_v49 = vld [vmem:[%s3671_s12 + $0x1f0] sm:$0xff] }
 0x32e   :  { %520 = vmatmul.mubr.f32.vlgmr.msra.gmra.mrb[4].mxu1 %v422_v46  ;;  %v854_v57 = vld [vmem:[%s3671_s12 + $0x1b8] sm:$0xff] }
 0x32f   :  { %766 = vmatprep.mubr.f32.mxu1 %v2667_v1  ;;  %2258 = vmatpush3.bf16.msra.mxu0 %v2257_v60  ;;  %v803_v60 = vld [vmem:[%s3671_s12 + $0x20] sm:$0xff] }
 0x330   :  { %2260 = vmatprep.subr.bf16.mxu0 %v2259_v63  ;;  %2270 = vmatpush1.bf16.msra.mxu1 %v2269_v52  ;;  %v2275_v62 = vpack.c.bf16 %v803_v60, %v800_v59  ;;  %v802_v63 = vld [vmem:[%s3671_s12 + $0x18] sm:$0xff]  ;;  %v851_v52 = vld [vmem:[%s3671_s12 + $0x1a0] sm:$0xff] }
 0x331   :  { %2272 = vmatprep.subr.bf16.mxu1 %v2271_v55  ;;  %v2307_v54 = vpack.c.bf16 %v851_v52, %v848_v50  ;;  %v847_v55 = vld [vmem:[%s3671_s12 + $0x180] sm:$0xff]  ;;  %v864_v50 = vld [vmem:[%s3671_s12 + $0x208] sm:$0xff] }
 0x332   :  { %v2309_v59 = vpack.c.bf16 %v850_v56, %v847_v55  ;;  %v816_v55 = vld [vmem:[%s3671_s12 + $0x88] sm:$0xff]  ;;  %v867_v56 = vld [vmem:[%s3671_s12 + $0x220] sm:$0xff] }
 0x333   :  { %2262 = vmatpush3.bf16.msra.mxu0 %v2261_v4  ;;  %v2277_v4 = vpack.c.bf16 %v802_v63, %v799_v61  ;;  %v853_v61 = vld [vmem:[%s3671_s12 + $0x1b0] sm:$0xff]  ;;  %v860_v63 = vld [vmem:[%s3671_s12 + $0x1e8] sm:$0xff] }
 0x334   :  { %2264 = vmatprep.subr.bf16.mxu0 %v2263_v8  ;;  %2274 = vmatpush1.bf16.msra.mxu1 %v2273_v58  ;;  %v812_v8 = vld [vmem:[%s3671_s12 + $0x68] sm:$0xff]  ;;  %v857_v58 = vld [vmem:[%s3671_s12 + $0x1d0] sm:$0xff] }
 0x335   :  { %v2311_v60 = vpack.c.bf16 %v857_v58, %v854_v57  ;;  %v870_v57 = vld [vmem:[%s3671_s12 + $0x238] sm:$0xff] }
 0x337   :  { %2266 = vmatpush3.bf16.msra.mxu0 %v2265_v10  ;;  %v2281_v10 = vpack.c.bf16 %v808_v7, %v805_v6  ;;  %v862_v6 = vld [vmem:[%s3671_s12 + $0x1f8] sm:$0xff] }
 0x338   :  { %2276 = vmatprep.subr.bf16.mxu0 %v2275_v62  ;;  %v856_v62 = vld [vmem:[%s3671_s12 + $0x1c8] sm:$0xff]  ;;  %v866_v7 = vld [vmem:[%s3671_s12 + $0x218] sm:$0xff] }
 0x339   :  { %v2313_v3 = vpack.c.bf16 %v856_v62, %v853_v61  ;;  %v822_v61 = vld [vmem:[%s3671_s12 + $0xb8] sm:$0xff]  ;;  %v873_v62 = vld [vmem:[%s3671_s12 + $0x250] sm:$0xff] }
 0x401   :  { %v3118_v11 = vpop.f32.mrb[4].mxu1 }
 0x402   :  { %v526_v12 = vsel %vm201_vm1, %v3118_v11, 0.0  ;;  %v540_v13 = vmul.f32 %v3118_v11, %v3118_v11  ;;  %v3124_v14 = vpop.f32.mrb[5].mxu1 }
 0x403   :  { %v527_v15 = vrot.slane %v526_v12, 4  ;;  %v533_v16 = vsel %vm201_vm1, %v3124_v14, 0.0  ;;  %v541_v17 = vmul.f32 %v3124_v14, %v3124_v14 }
 0x404   :  { %v542_v18 = vsel %vm201_vm1, %v540_v13, 0.0  ;;  %v534_v19 = vrot.slane %v533_v16, 4  ;;  %v811_v13 = vld [vmem:[%s3671_s12 + $0x60] sm:$0xff] }
 0x405   :  { %v528_v20 = vadd.f32 %v527_v15, %v526_v12  ;;  %v543_v21 = vrot.slane %v542_v18, 4  ;;  %v549_v22 = vsel %vm201_vm1, %v541_v17, 0.0  ;;  %v2283_v12 = vpack.c.bf16 %v815_v9, %v812_v8  ;;  %v814_v15 = vld [vmem:[%s3671_s12 + $0x78] sm:$0xff]  ;;  %v821_v17 = vld [vmem:[%s3671_s12 + $0xb0] sm:$0xff] }
 0x406   :  { %v535_v24 = vadd.f32 %v534_v19, %v533_v16  ;;  %v550_v25 = vrot.slane %v549_v22, 4  ;;  %v818_v16 = vld [vmem:[%s3671_s12 + $0x98] sm:$0xff]  ;;  %v869_v8 = vld [vmem:[%s3671_s12 + $0x230] sm:$0xff] }
 0x407   :  { %v529_v26 = vrot.slane %v528_v20, 2  ;;  %v544_v28 = vadd.f32 %v543_v21, %v542_v18  ;;  %v2285_v18 = vpack.c.bf16 %v814_v15, %v811_v13  ;;  %v2287_v19 = vpack.c.bf16 %v821_v17, %v818_v16  ;;  %v820_v21 = vld [vmem:[%s3671_s12 + $0xa8] sm:$0xff]  ;;  %v875_v16 = vld [vmem:[%s3671_s12 + $0x260] sm:$0xff] }
 0x408   :  { %v536_v29 = vrot.slane %v535_v24, 2  ;;  %v551_v30 = vadd.f32 %v550_v25, %v549_v22  ;;  %v824_v22 = vld [vmem:[%s3671_s12 + $0xc8] sm:$0xff]  ;;  %v849_v25 = vld [vmem:[%s3671_s12 + $0x190] sm:$0xff] }
 0x409   :  { %v530_v31 = vadd.f32 %v529_v26, %v528_v20  ;;  %v545_v32 = vrot.slane %v544_v28, 2  ;;  %v817_v20 = vld [vmem:[%s3671_s12 + $0x90] sm:$0xff]  ;;  %v852_v26 = vld [vmem:[%s3671_s12 + $0x1a8] sm:$0xff] }
 0x40a   :  { %v537_v33 = vadd.f32 %v536_v29, %v535_v24  ;;  %v552_v34 = vrot.slane %v551_v30, 2  ;;  %v827_v24 = vld [vmem:[%s3671_s12 + $0xe0] sm:$0xff]  ;;  %v2339_v29 = vpack.c.bf16 %v852_v26, %v849_v25  ;;  %v868_v13 = vld [vmem:[%s3671_s12 + $0x228] sm:$0xff] }
 0x40b   :  { %v546_v35 = vadd.f32 %v545_v32, %v544_v28  ;;  %v531_v39 = vrot.slane %v530_v31, 1  ;;  %v2289_v28 = vpack.c.bf16 %v820_v21, %v817_v20  ;;  %v826_v32 = vld [vmem:[%s3671_s12 + $0xd8] sm:$0xff]  ;;  %v872_v15 = vld [vmem:[%s3671_s12 + $0x248] sm:$0xff] }
 0x40c   :  { %v538_v36 = vrot.slane %v537_v33, 1  ;;  %v553_v37 = vadd.f32 %v552_v34, %v551_v30  ;;  %v2291_v30 = vpack.c.bf16 %v827_v24, %v824_v22  ;;  %v833_v34 = vld [vmem:[%s3671_s12 + $0x110] sm:$0xff]  ;;  %2340 = vmatprep.subr.bf16.mxu1 %v2339_v29  ;;  %v874_v20 = vld [vmem:[%s3671_s12 + $0x258] sm:$0xff] }
 0x40d   :  { %v547_v40 = vrot.slane %v546_v35, 1  ;;  %v532_v45 = vadd.f32 %v531_v39, %v530_v31  ;;  %v823_v31 = vld [vmem:[%s3671_s12 + $0xc0] sm:$0xff]  ;;  %v832_v39 = vld [vmem:[%s3671_s12 + $0x108] sm:$0xff] }
 0x40e   :  { %v554_v41 = vrot.slane %v553_v37, 1  ;;  %v539_v43 = vadd.f32 %v538_v36, %v537_v33  ;;  %v830_v33 = vld [vmem:[%s3671_s12 + $0xf8] sm:$0xff] }
 0x40f   :  { %v548_v42 = vadd.f32 %v547_v40, %v546_v35  ;;  %v2293_v35 = vpack.c.bf16 %v826_v32, %v823_v31  ;;  %v2295_v36 = vpack.c.bf16 %v833_v34, %v830_v33  ;;  %v836_v40 = vld [vmem:[%s3671_s12 + $0x128] sm:$0xff]  ;;  %v1745_v33 = vld [vmem:[%s3669_s10] ss:$0 sm:$0xff] }
 0x410   :  { %v555_v44 = vadd.f32 %v554_v41, %v553_v37  ;;  %v829_v37 = vld [vmem:[%s3671_s12 + $0xf0] sm:$0xff]  ;;  %v839_v41 = vld [vmem:[%s3671_s12 + $0x140] sm:$0xff] }
 0x411   :  { %v556_v23 = vsel %vm217_vm2, %v532_v45, %v548_v42  ;;  %v2297_v42 = vpack.c.bf16 %v832_v39, %v829_v37  ;;  %v838_v45 = vld [vmem:[%s3671_s12 + $0x138] sm:$0xff]  ;;  %v677_v37 = vld [vmem:[%s3670_s11] sm:$0x1] }
 0x412   :  { %v557_v46 = vsel %vm217_vm2, %v539_v43, %v555_v44  ;;  %v2299_v43 = vpack.c.bf16 %v839_v41, %v836_v40  ;;  %v835_v44 = vld [vmem:[%s3671_s12 + $0x120] sm:$0xff]  ;;  %v801_v40 = vld [vmem:[%s3671_s12 + $0x10] sm:$0xff]  ;;  %v804_v41 = vld [vmem:[%s3671_s12 + $0x28] sm:$0xff] }
 0x413   :  { %654 = vmatprep.mubr.f32.mxu0 %v557_v46  ;;  %v842_v46 = vld [vmem:[%s3671_s12 + $0x158] sm:$0xff]  ;;  %v2301_v47 = vpack.c.bf16 %v838_v45, %v835_v44 }
 0x414   :  { %655 = vmatmul.mubr.f32.vlgmr.msra.gmra.mrb[2].mxu0 %v556_v23  ;;  %v845_v23 = vld [vmem:[%s3671_s12 + $0x170] sm:$0xff]  ;;  %v858_v44 = vld [vmem:[%s3671_s12 + $0x1d8] sm:$0xff] }
 0x415   :  { %2278 = vmatpush1.bf16.msra.mxu0 %v2277_v4  ;;  %v2303_v48 = vpack.c.bf16 %v845_v23, %v842_v46  ;;  %v2315_v4 = vpack.c.bf16 %v863_v2, %v860_v63  ;;  %v2341_v46 = vpack.c.bf16 %v804_v41, %v801_v40  ;;  %v876_v63 = vld [vmem:[%s3671_s12 + $0x268] sm:$0xff]  ;;  %v894_v40 = vld [vmem:[%s3671_s12 + $0x2f8] sm:$0xff]  ;;  %v889_v41 = vld [vmem:[%s3671_s12 + $0x2d0] sm:$0xff] }
 0x416   :  { %2280 = vmatprep.subr.bf16.mxu0 %v2279_v5  ;;  %v859_v5 = vld [vmem:[%s3671_s12 + $0x1e0] sm:$0xff] }
 0x417   :  { %v2317_v9 = vpack.c.bf16 %v862_v6, %v859_v5  ;;  %v828_v5 = vld [vmem:[%s3671_s12 + $0xe8] sm:$0xff] }
 0x419   :  { %2282 = vmatpush1.bf16.msra.mxu0 %v2281_v10  ;;  %v2319_v10 = vpack.c.bf16 %v869_v8, %v866_v7  ;;  %v878_v7 = vld [vmem:[%s3671_s12 + $0x278] sm:$0xff]  ;;  %v881_v8 = vld [vmem:[%s3671_s12 + $0x290] sm:$0xff] }
 0x41a   :  { %2284 = vmatprep.subr.bf16.mxu0 %v2283_v12  ;;  %v865_v12 = vld [vmem:[%s3671_s12 + $0x210] sm:$0xff] }
 0x41b   :  { %v2321_v17 = vpack.c.bf16 %v868_v13, %v865_v12  ;;  %v882_v12 = vld [vmem:[%s3671_s12 + $0x298] sm:$0xff]  ;;  %v877_v13 = vld [vmem:[%s3671_s12 + $0x270] sm:$0xff] }
 0x41d   :  { %2286 = vmatpush1.bf16.msra.mxu0 %v2285_v18  ;;  %v2323_v18 = vpack.c.bf16 %v875_v16, %v872_v15  ;;  %v880_v15 = vld [vmem:[%s3671_s12 + $0x288] sm:$0xff] }
 0x41e   :  { %2288 = vmatprep.subr.bf16.mxu0 %v2287_v19  ;;  %v871_v19 = vld [vmem:[%s3671_s12 + $0x240] sm:$0xff] }
 0x41f   :  { %v2325_v21 = vpack.c.bf16 %v874_v20, %v871_v19  ;;  %v834_v19 = vld [vmem:[%s3671_s12 + $0x118] sm:$0xff] }
 0x421   :  { %2290 = vmatpush1.bf16.msra.mxu0 %v2289_v28 }
 0x422   :  { %2292 = vmatprep.subr.bf16.mxu0 %v2291_v30 }
 0x425   :  { %2294 = vmatpush1.bf16.msra.mxu0 %v2293_v35 }
 0x426   :  { %2296 = vmatprep.subr.bf16.mxu0 %v2295_v36 }
 0x429   :  { %2298 = vmatpush1.bf16.msra.mxu0 %v2297_v42 }
 0x42a   :  { %2300 = vmatprep.subr.bf16.mxu0 %v2299_v43  ;;  %v855_v43 = vld [vmem:[%s3671_s12 + $0x1c0] sm:$0xff] }
 0x42b   :  { %v2343_v23 = vpack.c.bf16 %v858_v44, %v855_v43 }
 0x42d   :  { %2302 = vmatpush1.bf16.msra.mxu0 %v2301_v47  ;;  %v807_v47 = vld [vmem:[%s3671_s12 + $0x40] sm:$0xff] }
 0x42e   :  { %2304 = vmatprep.subr.bf16.mxu0 %v2303_v48  ;;  %v810_v48 = vld [vmem:[%s3671_s12 + $0x58] sm:$0xff] }
 0x42f   :  { %v2345_v52 = vpack.c.bf16 %v810_v48, %v807_v47  ;;  %v1100_v47 = vld [vmem:[#allocation6 + $0x80] sm:$0xff]  ;;  %v1101_v48 = vld [vmem:[#allocation6 + $0x88] sm:$0xff] }
 0x431   :  { %2306 = vmatpush1.bf16.msra.mxu0 %v2305_v53  ;;  %v2347_v53 = vpack.c.bf16 %v864_v50, %v861_v49 }
 0x432   :  { %2308 = vmatprep.subr.bf16.mxu0 %v2307_v54  ;;  %v813_v54 = vld [vmem:[%s3671_s12 + $0x70] sm:$0xff] }
 0x433   :  { %v2349_v58 = vpack.c.bf16 %v816_v55, %v813_v54 }
 0x435   :  { %2310 = vmatpush1.bf16.msra.mxu0 %v2309_v59  ;;  %v2351_v59 = vpack.c.bf16 %v870_v57, %v867_v56 }
 0x436   :  { %2312 = vmatprep.subr.bf16.mxu0 %v2311_v60  ;;  %v819_v60 = vld [vmem:[%s3671_s12 + $0xa0] sm:$0xff] }
 0x437   :  { %v2353_v2 = vpack.c.bf16 %v822_v61, %v819_v60  ;;  %v1085_v61 = vld [vmem:[#allocation6 + $0x8] sm:$0xff] }
 0x439   :  { %2314 = vmatpush1.bf16.msra.mxu0 %v2313_v3  ;;  %v2355_v3 = vpack.c.bf16 %v876_v63, %v873_v62  ;;  %v1116_v62 = vld [vmem:[#allocation6 + $0x100] sm:$0xff]  ;;  %v1117_v63 = vld [vmem:[#allocation6 + $0x108] sm:$0xff] }
 0x43a   :  { %2316 = vmatprep.subr.bf16.mxu0 %v2315_v4  ;;  %v825_v4 = vld [vmem:[%s3671_s12 + $0xd0] sm:$0xff] }
 0x43b   :  { %v2357_v6 = vpack.c.bf16 %v828_v5, %v825_v4  ;;  %v1103_v4 = vld [vmem:[#allocation6 + $0x98] sm:$0xff] }
 0x43d   :  { %2318 = vmatpush1.bf16.msra.mxu0 %v2317_v9  ;;  %v879_v9 = vld [vmem:[%s3671_s12 + $0x280] sm:$0xff] }
 0x43e   :  { %2320 = vmatprep.subr.bf16.mxu0 %v2319_v10  ;;  %v2327_v10 = vpack.c.bf16 %v881_v8, %v878_v7  ;;  %v2359_v16 = vpack.c.bf16 %v882_v12, %v879_v9  ;;  %v1086_v7 = vld [vmem:[#allocation6 + $0x10] sm:$0xff]  ;;  %v1119_v12 = vld [vmem:[#allocation6 + $0x118] sm:$0xff] }
 0x441   :  { %2322 = vmatpush1.bf16.msra.mxu0 %v2321_v17  ;;  %v2329_v17 = vpack.c.bf16 %v880_v15, %v877_v13  ;;  %v1104_v15 = vld [vmem:[#allocation6 + $0xa0] sm:$0xff] }
 0x442   :  { %2324 = vmatprep.subr.bf16.mxu0 %v2323_v18  ;;  %v831_v18 = vld [vmem:[%s3671_s12 + $0x100] sm:$0xff] }
 0x443   :  { %v2361_v20 = vpack.c.bf16 %v834_v19, %v831_v18  ;;  %v1088_v19 = vld [vmem:[#allocation6 + $0x20] sm:$0xff] }
 0x445   :  { %2326 = vmatpush1.bf16.msra.mxu0 %v2325_v21  ;;  %v884_v21 = vld [vmem:[%s3671_s12 + $0x2a8] sm:$0xff] }
 0x446   :  { %2328 = vmatprep.subr.bf16.mxu0 %v2327_v10  ;;  %v1118_v10 = vld [vmem:[#allocation6 + $0x110] sm:$0xff] }
 0x447   :  { %v2407_v18 = vpack.c.bf16 %v1119_v12, %v1118_v10 }
 0x449   :  { %2330 = vmatpush1.bf16.msra.mxu0 %v2329_v17 }
 0x4e7   :  { %v1816_v22 = vpop.f32.mrb[2].mxu0 }
 0x4e8   :  { %v1817_v24 = vpop.f32.mrb[3].mxu0 }
 0x4e9   :  { %v1818_v25 = vadd.f32 %v1817_v24, %v1816_v22  ;;  %v887_v22 = vld [vmem:[%s3671_s12 + $0x2c0] sm:$0xff]  ;;  %v885_v24 = vld [vmem:[%s3671_s12 + $0x2b0] sm:$0xff] }
 0x4eb   :  { %v660_v26 = vmul.f32 0.041666668, %v1818_v25  ;;  %v2331_v25 = vpack.c.bf16 %v887_v22, %v884_v21  ;;  %v1089_v21 = vld [vmem:[#allocation6 + $0x28] sm:$0xff]  ;;  %v1120_v22 = vld [vmem:[#allocation6 + $0x120] sm:$0xff] }
 0x4ed   :  { %v661_v28 = vmul.f32 %v660_v26, %v660_v26  ;;  %2332 = vmatprep.subr.bf16.mxu0 %v2331_v25  ;;  %v1106_v25 = vld [vmem:[#allocation6 + $0xb0] sm:$0xff] }
 0x4ef   :  { %v663_v29 = vrot.slane %v661_v28, 7  ;;  %v883_v28 = vld [vmem:[%s3671_s12 + $0x2a0] sm:$0xff] }
 0x4f1   :  { %v665_v30 = vsub.f32 %v660_v26, %v663_v29  ;;  %v886_v29 = vld [vmem:[%s3671_s12 + $0x2b8] sm:$0xff] }
 0x4f3   :  { %v666_v31 = vmax.f32 %v665_v30, 0.0 }
 0x4f5   :  { %v667_v32 = vadd.f32 1e-05, %v666_v31  ;;  %v2333_v31 = vpack.c.bf16 %v886_v29, %v883_v28  ;;  %v2381_v28 = vpack.c.bf16 %v1089_v21, %v1088_v19 }
 0x4f7   :  { %2555 = vrsqrt.f32 %v667_v32  ;;  %v837_v32 = vld [vmem:[%s3671_s12 + $0x130] sm:$0xff]  ;;  %2334 = vmatpush1.bf16.msra.mxu0 %v2333_v31 }
 0x4f8   :  { %v1090_v31 = vld [vmem:[#allocation6 + $0x30] sm:$0xff] }
 0x501   :  { %v2556_v34 = vpop.eup %2555 }
 0x502   :  { %v676_v35 = vmul.f32 %v2556_v34, %v1745_v33  ;;  %v840_v33 = vld [vmem:[%s3671_s12 + $0x148] sm:$0xff] }
 0x503   :  { %v2365_v34 = vpack.c.bf16 %v840_v33, %v837_v32  ;;  %v1091_v32 = vld [vmem:[#allocation6 + $0x38] sm:$0xff] }
 0x504   :  { %v679_v36 = vrot.slane %v676_v35, 1  ;;  %v890_v35 = vld [vmem:[%s3671_s12 + $0x2d8] sm:$0xff]  ;;  %v2385_v33 = vpack.c.bf16 %v1091_v32, %v1090_v31 }
 0x506   :  { %v681_v39 = vmul.f32 %v679_v36, %v660_v26  ;;  %v888_v26 = vld [vmem:[%s3671_s12 + $0x2c8] sm:$0xff] }
 0x507   :  { %v2363_v30 = vpack.c.bf16 %v888_v26, %v885_v24  ;;  %v1121_v24 = vld [vmem:[#allocation6 + $0x128] sm:$0xff]  ;;  %v1107_v26 = vld [vmem:[#allocation6 + $0xb8] sm:$0xff] }
 0x508   :  { %v682_v42 = vsub.f32 %v677_v37, %v681_v39  ;;  %v891_v37 = vld [vmem:[%s3671_s12 + $0x2e0] sm:$0xff]  ;;  %v2410_v29 = vpack.c.bf16 %v1121_v24, %v1120_v22 }
 0x509   :  { %v2367_v43 = vpack.c.bf16 %v894_v40, %v891_v37  ;;  %v1108_v37 = vld [vmem:[#allocation6 + $0xc0] sm:$0xff] }
 0x50a   :  { %v687_v45 = vrot.slane %v682_v42, %v2920_v27  ;;  %v892_v42 = vld [vmem:[%s3671_s12 + $0x2e8] sm:$0xff] }
 0x50b   :  { %v2337_v44 = vpack.c.bf16 %v892_v42, %v889_v41  ;;  %v1092_v41 = vld [vmem:[#allocation6 + $0x40] sm:$0xff]  ;;  %v1093_v42 = vld [vmem:[#allocation6 + $0x48] sm:$0xff] }
 0x50c   :  { %v689_v51 = vsel %vm217_vm2, %v679_v36, %v687_v45  ;;  %v893_v36 = vld [vmem:[%s3671_s12 + $0x2f0] sm:$0xff]  ;;  %v843_v45 = vld [vmem:[%s3671_s12 + $0x160] sm:$0xff] }
 0x50d   :  { %1746 = vmatmul.mubr.msk.f32.vlgmr.msra.gmra.mrb[6].mxu1 %vm698_vm5, %v689_v51  ;;  %v2335_v39 = vpack.c.bf16 %v893_v36, %v890_v35  ;;  %v2371_v51 = vpack.c.bf16 %v1101_v48, %v1100_v47  ;;  %v1123_v35 = vld [vmem:[#allocation6 + $0x138] sm:$0xff] }
 0x50e   :  { %2342 = vmatpush3.bf16.msra.mxu1 %v2341_v46  ;;  %v846_v46 = vld [vmem:[%s3671_s12 + $0x178] sm:$0xff] }
 0x50f   :  { %2344 = vmatprep.subr.bf16.mxu1 %v2343_v23  ;;  %2336 = vmatprep.subr.bf16.mxu0 %v2335_v39  ;;  %v2369_v23 = vpack.c.bf16 %v846_v46, %v843_v45  ;;  %v1109_v39 = vld [vmem:[#allocation6 + $0xc8] sm:$0xff]  ;;  %v1111_v47 = vld [vmem:[#allocation6 + $0xd8] sm:$0xff] }
 0x510   :  { %2338 = vmatpush1.bf16.msra.mxu0 %v2337_v44  ;;  %v2387_v40 = vpack.c.bf16 %v1109_v39, %v1108_v37  ;;  %v1124_v44 = vld [vmem:[#allocation6 + $0x140] sm:$0xff]  ;;  %v1125_v45 = vld [vmem:[#allocation6 + $0x148] sm:$0xff] }
 0x511   :  { %2403 = vmatprep.subr.bf16.mxu0 %v2665_v0  ;;  %v2416_v46 = vpack.c.bf16 %v1125_v45, %v1124_v44 }
 0x512   :  { %2346 = vmatpush3.bf16.msra.mxu1 %v2345_v52 }
 0x513   :  { %2348 = vmatprep.subr.bf16.mxu1 %v2347_v53 }
 0x516   :  { %2350 = vmatpush3.bf16.msra.mxu1 %v2349_v58 }
 0x517   :  { %2352 = vmatprep.subr.bf16.mxu1 %v2351_v59  ;;  %v1084_v59 = vld [vmem:[#allocation6] sm:$0xff] }
 0x51a   :  { %2354 = vmatpush3.bf16.msra.mxu1 %v2353_v2 }
 0x51b   :  { %2356 = vmatprep.subr.bf16.mxu1 %v2355_v3  ;;  %v1102_v3 = vld [vmem:[#allocation6 + $0x90] sm:$0xff] }
 0x51c   :  { %v2375_v9 = vpack.c.bf16 %v1103_v4, %v1102_v3  ;;  %v1115_v3 = vld [vmem:[#allocation6 + $0xf8] sm:$0xff]  ;;  %v1098_v4 = vld [vmem:[#allocation6 + $0x70] sm:$0xff] }
 0x51e   :  { %2358 = vmatpush3.bf16.msra.mxu1 %v2357_v6  ;;  %v2373_v6 = vpack.c.bf16 %v1085_v61, %v1084_v59  ;;  %v1097_v59 = vld [vmem:[#allocation6 + $0x68] sm:$0xff]  ;;  %v1128_v61 = vld [vmem:[#allocation6 + $0x160] sm:$0xff] }
 0x51f   :  { %2360 = vmatprep.subr.bf16.mxu1 %v2359_v16  ;;  %v1105_v16 = vld [vmem:[#allocation6 + $0xa8] sm:$0xff] }
 0x522   :  { %2362 = vmatpush3.bf16.msra.mxu1 %v2361_v20  ;;  %v2379_v20 = vpack.c.bf16 %v1105_v16, %v1104_v15 }
 0x523   :  { %2364 = vmatprep.subr.bf16.mxu1 %v2363_v30  ;;  %v2383_v30 = vpack.c.bf16 %v1107_v26, %v1106_v25 }
 0x526   :  { %2366 = vmatpush3.bf16.msra.mxu1 %v2365_v34  ;;  %v1122_v34 = vld [vmem:[#allocation6 + $0x130] sm:$0xff] }
 0x527   :  { %2368 = vmatprep.subr.bf16.mxu1 %v2367_v43  ;;  %v2413_v36 = vpack.c.bf16 %v1123_v35, %v1122_v34  ;;  %v2389_v43 = vpack.c.bf16 %v1093_v42, %v1092_v41 }
 0x52a   :  { %2370 = vmatpush3.bf16.msra.mxu1 %v2369_v23  ;;  %v1110_v23 = vld [vmem:[#allocation6 + $0xd0] sm:$0xff] }
 0x52b   :  { %2372 = vmatprep.subr.bf16.mxu1 %v2371_v51  ;;  %v2391_v48 = vpack.c.bf16 %v1111_v47, %v1110_v23  ;;  %v1094_v51 = vld [vmem:[#allocation6 + $0x50] sm:$0xff] }
 0x5e0   :  { %v768_v49 = vpop.f32.mrb[6].mxu1 }
 0x5e1   :  { %v776_v50 = vrot.slane %v768_v49, %v2920_v27  ;;  %v770_v52 = vpop.f32.mrb[7].mxu1  ;;  %v786_v55 = vrot.slane %v768_v49, %v3058_v38  ;;  %v1095_v49 = vld [vmem:[#allocation6 + $0x58] sm:$0xff] }
 0x5e2   :  { %v780_v53 = vrot.slane %v770_v52, %v2920_v27  ;;  %v790_v57 = vrot.slane %v770_v52, %v3058_v38  ;;  %v1126_v52 = vld [vmem:[#allocation6 + $0x150] sm:$0xff] }
 0x5e3   :  { %v781_v54 = vmul.f32 %v776_v50, %v3118_v11  ;;  %v2404_v11 = vpack.c.bf16 %v1117_v63, %v1116_v62  ;;  %v2393_v50 = vpack.c.bf16 %v1095_v49, %v1094_v51  ;;  %v1129_v62 = vld [vmem:[#allocation6 + $0x168] sm:$0xff] }
 0x5e4   :  { %v782_v56 = vmul.f32 %v780_v53, %v3124_v14  ;;  %v1087_v14 = vld [vmem:[#allocation6 + $0x18] sm:$0xff]  ;;  %v2422_v63 = vpack.c.bf16 %v1129_v62, %v1128_v61 }
 0x5e5   :  { %v791_v58 = vadd.f32 %v786_v55, %v781_v54  ;;  %v2377_v17 = vpack.c.bf16 %v1087_v14, %v1086_v7  ;;  %v1127_v53 = vld [vmem:[#allocation6 + $0x158] sm:$0xff]  ;;  %v1112_v55 = vld [vmem:[#allocation6 + $0xe0] sm:$0xff] }
 0x5e6   :  { %v792_v60 = vadd.f32 %v790_v57, %v782_v56  ;;  %v2419_v54 = vpack.c.bf16 %v1127_v53, %v1126_v52  ;;  %v1113_v56 = vld [vmem:[#allocation6 + $0xe8] sm:$0xff]  ;;  %v1131_v7 = vld [vmem:[#allocation6 + $0x178] sm:$0xff] }
 0x5e7   :  { %v795_v2 = vmul.f32 0.2, %v791_v58  ;;  %vm793_vm7 = vcmp.gt.f32.partialorder %v791_v58, 0.0  ;;  %v2395_v57 = vpack.c.bf16 %v1113_v56, %v1112_v55 }
 0x5e8   :  { %vm794_vm6 = vcmp.gt.f32.partialorder %v792_v60, 0.0  ;;  %v796_v5 = vmul.f32 0.2, %v792_v60 }
 0x5e9   :  { %v797_v13 = vsel %vm793_vm7, %v791_v58, %v795_v2  ;;  %v1096_v58 = vld [vmem:[#allocation6 + $0x60] sm:$0xff]  ;;  %v1114_v2 = vld [vmem:[#allocation6 + $0xf0] sm:$0xff] }
 0x5ea   :  { %v798_v8 = vsel %vm794_vm6, %v792_v60, %v796_v5  ;;  %v2397_v60 = vpack.c.bf16 %v1097_v59, %v1096_v58  ;;  %v2399_v5 = vpack.c.bf16 %v1115_v3, %v1114_v2 }
 0x5eb   :  { %959 = vmatprep.mubr.f32.mxu0 %v798_v8  ;;  %1030 = vmatprep.mubr.f32.mxu1 %v798_v8 }
 0x5ec   :  { %960 = vmatmul.mubr.f32.vlgmr.msra.gmra.mrb[4].mxu0 %v797_v13  ;;  %1031 = vmatmul.mubr.f32.vlgmr.msra.gmra.mrb[8].mxu1 %v797_v13 }
 0x5ed   :  { %2374 = vmatpush3.bf16.msra.mxu1 %v2373_v6  ;;  %2405 = vmatpush3.bf16.msra.mxu0 %v2404_v11  ;;  %v1099_v6 = vld [vmem:[#allocation6 + $0x78] sm:$0xff]  ;;  %v1130_v11 = vld [vmem:[#allocation6 + $0x170] sm:$0xff] }
 0x5ee   :  { %2376 = vmatprep.subr.bf16.mxu1 %v2375_v9  ;;  %2406 = vmatprep.subr.bf16.mxu0 %v2665_v0  ;;  %v2401_v8 = vpack.c.bf16 %v1099_v6, %v1098_v4  ;;  %v2425_v9 = vpack.c.bf16 %v1131_v7, %v1130_v11  ;;  %v1303_v4 = vld [vmem:[#allocation7 + $0x8] sm:$0xff]  ;;  %v1302_v11 = vld [vmem:[#allocation7] sm:$0xff]  ;;  %v1305_v7 = vld [vmem:[#allocation7 + $0x18] sm:$0xff] }
 0x5ef   :  { %2082 = vmatprep.mubr.msk.f32.mxu0 %vm2666_vm0, %v2667_v1 }
 0x5f1   :  { %2378 = vmatpush3.bf16.msra.mxu1 %v2377_v17  ;;  %2408 = vmatpush3.bf16.msra.mxu0 %v2407_v18 }
 0x5f2   :  { %2380 = vmatprep.subr.bf16.mxu1 %v2379_v20  ;;  %2409 = vmatprep.subr.bf16.mxu0 %v2665_v0 }
 0x5f5   :  { %2382 = vmatpush3.bf16.msra.mxu1 %v2381_v28  ;;  %2411 = vmatpush3.bf16.msra.mxu0 %v2410_v29 }
 0x5f6   :  { %2384 = vmatprep.subr.bf16.mxu1 %v2383_v30  ;;  %2412 = vmatprep.subr.bf16.mxu0 %v2665_v0 }
 0x5f9   :  { %2386 = vmatpush3.bf16.msra.mxu1 %v2385_v33  ;;  %2414 = vmatpush3.bf16.msra.mxu0 %v2413_v36 }
 0x5fa   :  { %2415 = vmatprep.subr.bf16.mxu0 %v2665_v0  ;;  %2388 = vmatprep.subr.bf16.mxu1 %v2387_v40 }
 0x5fd   :  { %2390 = vmatpush3.bf16.msra.mxu1 %v2389_v43  ;;  %2417 = vmatpush3.bf16.msra.mxu0 %v2416_v46 }
 0x5fe   :  { %2418 = vmatprep.subr.bf16.mxu0 %v2665_v0  ;;  %2392 = vmatprep.subr.bf16.mxu1 %v2391_v48 }
 0x601   :  { %2394 = vmatpush3.bf16.msra.mxu1 %v2393_v50  ;;  %2420 = vmatpush3.bf16.msra.mxu0 %v2419_v54 }
 0x602   :  { %2421 = vmatprep.subr.bf16.mxu0 %v2665_v0  ;;  %2396 = vmatprep.subr.bf16.mxu1 %v2395_v57 }
 0x605   :  { %2398 = vmatpush3.bf16.msra.mxu1 %v2397_v60  ;;  %2423 = vmatpush3.bf16.msra.mxu0 %v2422_v63 }
 0x606   :  { %2400 = vmatprep.subr.bf16.mxu1 %v2399_v5  ;;  %2424 = vmatprep.subr.bf16.mxu0 %v2665_v0  ;;  %v1306_v5 = vld [vmem:[#allocation7 + $0x20] sm:$0xff] }
 0x607   :  { %v2427_v6 = vpack.c.bf16 %v1306_v5, %v1303_v4  ;;  %v1338_v4 = vld [vmem:[#allocation7 + $0x120] sm:$0xff]  ;;  %v1341_v5 = vld [vmem:[#allocation7 + $0x138] sm:$0xff] }
 0x609   :  { %2402 = vmatpush3.bf16.msra.mxu1 %v2401_v8  ;;  %2426 = vmatpush3.bf16.msra.mxu0 %v2425_v9  ;;  %v1304_v8 = vld [vmem:[#allocation7 + $0x10] sm:$0xff]  ;;  %v2429_v9 = vpack.c.bf16 %v1305_v7, %v1302_v11  ;;  %v2453_v11 = vpack.c.bf16 %v1341_v5, %v1338_v4  ;;  %v1343_v7 = vld [vmem:[#allocation7 + $0x148] sm:$0xff] }
 0x60a   :  { %2459 = vmatprep.subr.bf16.mxu0 %v2665_v0  ;;  %2428 = vmatprep.subr.bf16.mxu1 %v2427_v6  ;;  %v1340_v6 = vld [vmem:[#allocation7 + $0x130] sm:$0xff]  ;;  %v1567_v4 = vld [vmem:[%s3676_s17 + $0x128] sm:$0xff] }
 0x6bf   :  { %v3447_v14 = vpop.f32.mrb[4].mxu0  ;;  %v1851_v10 = vpop.f32.mrb[8].mxu1 }
 0x6c0   :  { %v1036_v12 = vsel %vm201_vm1, %v3447_v14, 0.0  ;;  %v1057_v13 = vmul.f32 %v3447_v14, %v3447_v14  ;;  %v3453_v15 = vpop.f32.mrb[5].mxu0  ;;  %v1852_v16 = vpop.f32.mrb[9].mxu1 }
 0x6c1   :  { %v1037_v17 = vrot.slane %v1036_v12, 4  ;;  %v1043_v18 = vsel %vm201_vm1, %v3453_v15, 0.0  ;;  %v1058_v19 = vmul.f32 %v3453_v15, %v3453_v15  ;;  %v3459_v20 = vadd.f32 %v1852_v16, %v1851_v10  ;;  %v1307_v10 = vld [vmem:[#allocation7 + $0x28] sm:$0xff]  ;;  %v1312_v16 = vld [vmem:[#allocation7 + $0x50] sm:$0xff] }
 0x6c2   :  { %v1060_v21 = vsel %vm201_vm1, %v1057_v13, 0.0  ;;  %v1044_v22 = vrot.slane %v1043_v18, 4  ;;  %v1309_v13 = vld [vmem:[#allocation7 + $0x38] sm:$0xff] }
 0x6c3   :  { %v1038_v24 = vadd.f32 %v1037_v17, %v1036_v12  ;;  %v1061_v25 = vrot.slane %v1060_v21, 4  ;;  %v1067_v26 = vsel %vm201_vm1, %v1058_v19, 0.0  ;;  %v1050_v28 = vsel %vm201_vm1, %v3459_v20, 0.0  ;;  %v1311_v19 = vld [vmem:[#allocation7 + $0x48] sm:$0xff] }
 0x6c4   :  { %v1045_v29 = vadd.f32 %v1044_v22, %v1043_v18  ;;  %v1068_v30 = vrot.slane %v1067_v26, 4  ;;  %v1051_v31 = vrot.slane %v1050_v28, 4  ;;  %v1059_v32 = vmul.f32 %v3459_v20, %v3459_v20  ;;  %v1308_v18 = vld [vmem:[#allocation7 + $0x30] sm:$0xff] }
 0x6c5   :  { %v1039_v33 = vrot.slane %v1038_v24, 2  ;;  %v1062_v34 = vadd.f32 %v1061_v25, %v1060_v21  ;;  %v2460_v12 = vpack.c.bf16 %v1307_v10, %v1304_v8  ;;  %v2431_v17 = vpack.c.bf16 %v1312_v16, %v1309_v13  ;;  %v1310_v21 = vld [vmem:[#allocation7 + $0x40] sm:$0xff]  ;;  %v1348_v10 = vld [vmem:[#allocation7 + $0x170] sm:$0xff]  ;;  %v1347_v16 = vld [vmem:[#allocation7 + $0x168] sm:$0xff] }
 0x6c6   :  { %v1046_v35 = vrot.slane %v1045_v29, 2  ;;  %v1069_v36 = vadd.f32 %v1068_v30, %v1067_v26  ;;  %v1052_v37 = vadd.f32 %v1051_v31, %v1050_v28  ;;  %v1074_v39 = vsel %vm201_vm1, %v1059_v32, 0.0  ;;  %v1315_v26 = vld [vmem:[#allocation7 + $0x68] sm:$0xff]  ;;  %v1318_v28 = vld [vmem:[#allocation7 + $0x80] sm:$0xff]  ;;  %v1317_v31 = vld [vmem:[#allocation7 + $0x78] sm:$0xff] }
 0x6c7   :  { %v1040_v40 = vadd.f32 %v1039_v33, %v1038_v24  ;;  %v1063_v41 = vrot.slane %v1062_v34, 2  ;;  %v1075_v42 = vrot.slane %v1074_v39, 4  ;;  %v2433_v22 = vpack.c.bf16 %v1311_v19, %v1308_v18  ;;  %v1313_v24 = vld [vmem:[#allocation7 + $0x58] sm:$0xff]  ;;  %v1314_v30 = vld [vmem:[#allocation7 + $0x60] sm:$0xff]  ;;  %v1316_v32 = vld [vmem:[#allocation7 + $0x70] sm:$0xff] }
 0x6c8   :  { %v1047_v43 = vadd.f32 %v1046_v35, %v1045_v29  ;;  %v1070_v44 = vrot.slane %v1069_v36, 2  ;;  %v1053_v45 = vrot.slane %v1052_v37, 2  ;;  %v2463_v25 = vpack.c.bf16 %v1313_v24, %v1310_v21  ;;  %v1344_v13 = vld [vmem:[#allocation7 + $0x150] sm:$0xff]  ;;  %v1349_v19 = vld [vmem:[#allocation7 + $0x178] sm:$0xff]  ;;  %v1547_v24 = vld [vmem:[%s3676_s17 + $0x88] sm:$0xff] }
 0x6c9   :  { %v1064_v46 = vadd.f32 %v1063_v41, %v1062_v34  ;;  %v1076_v23 = vadd.f32 %v1075_v42, %v1074_v39  ;;  %v1041_v49 = vrot.slane %v1040_v40, 1  ;;  %v2435_v29 = vpack.c.bf16 %v1318_v28, %v1315_v26  ;;  %v1319_v34 = vld [vmem:[#allocation7 + $0x88] sm:$0xff]  ;;  %v1322_v42 = vld [vmem:[#allocation7 + $0xa0] sm:$0xff] }
 0x6ca   :  { %v1054_v47 = vadd.f32 %v1053_v45, %v1052_v37  ;;  %v1048_v48 = vrot.slane %v1047_v43, 1  ;;  %v1071_v51 = vadd.f32 %v1070_v44, %v1069_v36  ;;  %v2437_v33 = vpack.c.bf16 %v1317_v31, %v1314_v30  ;;  %v1321_v36 = vld [vmem:[#allocation7 + $0x98] sm:$0xff]  ;;  %v1324_v37 = vld [vmem:[#allocation7 + $0xb0] sm:$0xff]  ;;  %v1323_v41 = vld [vmem:[#allocation7 + $0xa8] sm:$0xff] }
 0x6cb   :  { %v1077_v50 = vrot.slane %v1076_v23, 2  ;;  %v1065_v52 = vrot.slane %v1064_v46, 1  ;;  %v1042_v59 = vadd.f32 %v1041_v49, %v1040_v40  ;;  %v2466_v35 = vpack.c.bf16 %v1319_v34, %v1316_v32  ;;  %v1320_v40 = vld [vmem:[#allocation7 + $0x90] sm:$0xff]  ;;  %v1325_v44 = vld [vmem:[#allocation7 + $0xb8] sm:$0xff] }
 0x6cc   :  { %v1072_v53 = vrot.slane %v1071_v51, 1  ;;  %v1055_v55 = vrot.slane %v1054_v47, 1  ;;  %v1049_v57 = vadd.f32 %v1048_v48, %v1047_v43  ;;  %v2439_v39 = vpack.c.bf16 %v1324_v37, %v1321_v36  ;;  %v1326_v48 = vld [vmem:[#allocation7 + $0xc0] sm:$0xff]  ;;  %v1328_v49 = vld [vmem:[#allocation7 + $0xd0] sm:$0xff] }
 0x6cd   :  { %v1066_v54 = vadd.f32 %v1065_v52, %v1064_v46  ;;  %v1078_v56 = vadd.f32 %v1077_v50, %v1076_v23  ;;  %v2441_v43 = vpack.c.bf16 %v1323_v41, %v1320_v40  ;;  %v2469_v45 = vpack.c.bf16 %v1325_v44, %v1322_v42  ;;  %v1327_v46 = vld [vmem:[#allocation7 + $0xc8] sm:$0xff]  ;;  %v1330_v23 = vld [vmem:[#allocation7 + $0xe0] sm:$0xff] }
 0x6ce   :  { %v1073_v58 = vadd.f32 %v1072_v53, %v1071_v51  ;;  %v1056_v63 = vadd.f32 %v1055_v55, %v1054_v47  ;;  %v2443_v47 = vpack.c.bf16 %v1330_v23, %v1327_v46  ;;  %v1329_v51 = vld [vmem:[#allocation7 + $0xd8] sm:$0xff]  ;;  %v1331_v52 = vld [vmem:[#allocation7 + $0xe8] sm:$0xff]  ;;  %v1336_v55 = vld [vmem:[#allocation7 + $0x110] sm:$0xff]  ;;  %v2478_v8 = vpack.c.bf16 %v1343_v7, %v1340_v6 }
 0x6cf   :  { %v1079_v60 = vrot.slane %v1078_v56, 1  ;;  %v1081_v62 = vsel %vm217_vm2, %v1042_v59, %v1066_v54  ;;  %v2445_v50 = vpack.c.bf16 %v1329_v51, %v1326_v48  ;;  %v2472_v53 = vpack.c.bf16 %v1331_v52, %v1328_v49  ;;  %v1333_v54 = vld [vmem:[#allocation7 + $0xf8] sm:$0xff]  ;;  %v1334_v59 = vld [vmem:[#allocation7 + $0x100] sm:$0xff]  ;;  %v1563_v23 = vld [vmem:[%s3676_s17 + $0x108] sm:$0xff] }
 0x6d0   :  { %v1082_v61 = vsel %vm217_vm2, %v1049_v57, %v1073_v58  ;;  %v1332_v57 = vld [vmem:[#allocation7 + $0xf0] sm:$0xff]  ;;  %v1335_v58 = vld [vmem:[#allocation7 + $0x108] sm:$0xff]  ;;  %v2457_v18 = vpack.c.bf16 %v1347_v16, %v1344_v13  ;;  %v1747_v40 = vld [vmem:[%s3674_s15] ss:$0 sm:$0xff] }
 0x6d1   :  { %1196 = vmatprep.mubr.f32.mxu1 %v1082_v61  ;;  %v1080_v2 = vadd.f32 %v1079_v60, %v1078_v56  ;;  %v2447_v56 = vpack.c.bf16 %v1336_v55, %v1333_v54  ;;  %v2449_v60 = vpack.c.bf16 %v1335_v58, %v1332_v57  ;;  %v1337_v61 = vld [vmem:[#allocation7 + $0x118] sm:$0xff]  ;;  %v1289_v44 = vld [vmem:[%s3675_s16] sm:$0x1]  ;;  %v1531_v48 = vld [vmem:[%s3676_s17 + $0x8] sm:$0xff] }
 0x6d2   :  { %1197 = vmatmul.mubr.f32.vlgmr.msra.gmra.mrb[10].mxu1 %v1081_v62  ;;  %v2475_v62 = vpack.c.bf16 %v1337_v61, %v1334_v59  ;;  %v1562_v46 = vld [vmem:[%s3676_s17 + $0x100] sm:$0xff]  ;;  %v1548_v49 = vld [vmem:[%s3676_s17 + $0x90] sm:$0xff]  ;;  %v1533_v59 = vld [vmem:[%s3676_s17 + $0x18] sm:$0xff] }
 0x6d3   :  { %v1083_v3 = vsel %vm217_vm2, %v1056_v63, %v1080_v2  ;;  %1414 = vmatprep.mubr.f32.mxu1 %v2667_v1  ;;  %2430 = vmatpush1.bf16.msra.mxu1 %v2429_v9  ;;  %v1339_v63 = vld [vmem:[#allocation7 + $0x128] sm:$0xff]  ;;  %v1342_v2 = vld [vmem:[#allocation7 + $0x140] sm:$0xff]  ;;  %v1345_v9 = vld [vmem:[#allocation7 + $0x158] sm:$0xff] }
 0x6d4   :  { %2083 = vmatmul.mubr.f32.vlgmr.msra.gmra.mrb[6].mxu0 %v1083_v3  ;;  %2432 = vmatprep.subr.bf16.mxu1 %v2431_v17  ;;  %v2451_v3 = vpack.c.bf16 %v1342_v2, %v1339_v63  ;;  %v1346_v17 = vld [vmem:[#allocation7 + $0x160] sm:$0xff]  ;;  %v1564_v55 = vld [vmem:[%s3676_s17 + $0x110] sm:$0xff]  ;;  %v1569_v13 = vld [vmem:[%s3676_s17 + $0x138] sm:$0xff] }
 0x6d5   :  { %2117 = vmatprep.mubr.msk.f32.mxu0 %vm2666_vm0, %v2667_v1  ;;  %2461 = vmatpush3.bf16.msra.mxu0 %v2460_v12  ;;  %v2455_v12 = vpack.c.bf16 %v1348_v10, %v1345_v9  ;;  %v2481_v21 = vpack.c.bf16 %v1349_v19, %v1346_v17  ;;  %v1532_v58 = vld [vmem:[%s3676_s17 + $0x10] sm:$0xff]  ;;  %v1550_v61 = vld [vmem:[%s3676_s17 + $0xa0] sm:$0xff]  ;;  %v1537_v17 = vld [vmem:[%s3676_s17 + $0x38] sm:$0xff] }
 0x6d6   :  { %2462 = vmatprep.subr.bf16.mxu0 %v2665_v0  ;;  %v2489_v2 = vpack.c.bf16 %v1533_v59, %v1532_v58  ;;  %v1534_v6 = vld [vmem:[%s3676_s17 + $0x20] sm:$0xff]  ;;  %v1552_v7 = vld [vmem:[%s3676_s17 + $0xb0] sm:$0xff]  ;;  %v1555_v19 = vld [vmem:[%s3676_s17 + $0xc8] sm:$0xff] }
 0x6d7   :  { %2434 = vmatpush1.bf16.msra.mxu1 %v2433_v22  ;;  %v1546_v22 = vld [vmem:[%s3676_s17 + $0x80] sm:$0xff] }
 0x6d8   :  { %2436 = vmatprep.subr.bf16.mxu1 %v2435_v29 }
 0x6d9   :  { %2464 = vmatpush3.bf16.msra.mxu0 %v2463_v25  ;;  %v2483_v25 = vpack.c.bf16 %v1547_v24, %v1546_v22  ;;  %v1570_v24 = vld [vmem:[%s3676_s17 + $0x140] sm:$0xff] }
 0x6da   :  { %2465 = vmatprep.subr.bf16.mxu0 %v2665_v0 }
 0x6db   :  { %2438 = vmatpush1.bf16.msra.mxu1 %v2437_v33 }
 0x6dc   :  { %2440 = vmatprep.subr.bf16.mxu1 %v2439_v39 }
 0x6dd   :  { %2467 = vmatpush3.bf16.msra.mxu0 %v2466_v35 }
 0x6de   :  { %2468 = vmatprep.subr.bf16.mxu0 %v2665_v0 }
 0x6df   :  { %2442 = vmatpush1.bf16.msra.mxu1 %v2441_v43 }
 0x6e0   :  { %2444 = vmatprep.subr.bf16.mxu1 %v2443_v47  ;;  %v1530_v47 = vld [vmem:[%s3676_s17] sm:$0xff] }
 0x6e1   :  { %2470 = vmatpush3.bf16.msra.mxu0 %v2469_v45  ;;  %v2485_v54 = vpack.c.bf16 %v1531_v48, %v1530_v47  ;;  %v1542_v47 = vld [vmem:[%s3676_s17 + $0x60] sm:$0xff]  ;;  %v1543_v48 = vld [vmem:[%s3676_s17 + $0x68] sm:$0xff] }
 0x6e2   :  { %2471 = vmatprep.subr.bf16.mxu0 %v2665_v0 }
 0x6e3   :  { %2446 = vmatpush1.bf16.msra.mxu1 %v2445_v50  ;;  %v1549_v50 = vld [vmem:[%s3676_s17 + $0x98] sm:$0xff] }
 0x6e4   :  { %2448 = vmatprep.subr.bf16.mxu1 %v2447_v56  ;;  %v1565_v56 = vld [vmem:[%s3676_s17 + $0x118] sm:$0xff]  ;;  %v2487_v57 = vpack.c.bf16 %v1549_v50, %v1548_v49  ;;  %v1576_v49 = vld [vmem:[%s3676_s17 + $0x170] sm:$0xff] }
 0x6e5   :  { %2473 = vmatpush3.bf16.msra.mxu0 %v2472_v53  ;;  %v2516_v53 = vpack.c.bf16 %v1563_v23, %v1562_v46  ;;  %v2519_v63 = vpack.c.bf16 %v1565_v56, %v1564_v55  ;;  %v1559_v46 = vld [vmem:[%s3676_s17 + $0xe8] sm:$0xff]  ;;  %v1577_v50 = vld [vmem:[%s3676_s17 + $0x178] sm:$0xff] }
 0x6e6   :  { %2474 = vmatprep.subr.bf16.mxu0 %v2665_v0  ;;  %v1545_v56 = vld [vmem:[%s3676_s17 + $0x78] sm:$0xff] }
 0x6e7   :  { %2450 = vmatpush1.bf16.msra.mxu1 %v2449_v60 }
 0x6e8   :  { %2452 = vmatprep.subr.bf16.mxu1 %v2451_v3  ;;  %v1566_v3 = vld [vmem:[%s3676_s17 + $0x120] sm:$0xff] }
 0x6e9   :  { %2476 = vmatpush3.bf16.msra.mxu0 %v2475_v62  ;;  %v1551_v62 = vld [vmem:[%s3676_s17 + $0xa8] sm:$0xff]  ;;  %v2522_v9 = vpack.c.bf16 %v1567_v4, %v1566_v3 }
 0x6ea   :  { %2477 = vmatprep.subr.bf16.mxu0 %v2665_v0  ;;  %v2491_v5 = vpack.c.bf16 %v1551_v62, %v1550_v61 }
 0x6eb   :  { %2454 = vmatpush1.bf16.msra.mxu1 %v2453_v11  ;;  %v1535_v11 = vld [vmem:[%s3676_s17 + $0x28] sm:$0xff] }
 0x6ec   :  { %2456 = vmatprep.subr.bf16.mxu1 %v2455_v12  ;;  %v2493_v10 = vpack.c.bf16 %v1535_v11, %v1534_v6  ;;  %v1568_v12 = vld [vmem:[%s3676_s17 + $0x130] sm:$0xff] }
 0x6ed   :  { %2479 = vmatpush3.bf16.msra.mxu0 %v2478_v8  ;;  %v1553_v8 = vld [vmem:[%s3676_s17 + $0xb8] sm:$0xff] }
 0x6ee   :  { %2480 = vmatprep.subr.bf16.mxu0 %v2665_v0  ;;  %v2495_v16 = vpack.c.bf16 %v1553_v8, %v1552_v7 }
 0x6ef   :  { %2458 = vmatpush1.bf16.msra.mxu1 %v2457_v18  ;;  %v1554_v18 = vld [vmem:[%s3676_s17 + $0xc0] sm:$0xff] }
 0x6f0   :  { %2484 = vmatprep.subr.bf16.mxu1 %v2483_v25  ;;  %v1571_v25 = vld [vmem:[%s3676_s17 + $0x148] sm:$0xff] }
 0x6f1   :  { %2482 = vmatpush3.bf16.msra.mxu0 %v2481_v21  ;;  %v2525_v21 = vpack.c.bf16 %v1569_v13, %v1568_v12 }
 0x6f2   :  { %2515 = vmatprep.subr.bf16.mxu0 %v2665_v0 }
 0x7a5   :  { %v1886_v26 = vpop.f32.mrb[10].mxu1 }
 0x7a6   :  { %v1887_v28 = vpop.f32.mrb[11].mxu1 }
 0x7a7   :  { %v1888_v29 = vadd.f32 %v1887_v28, %v1886_v26  ;;  %v1268_v30 = vpop.f32.mrb[6].mxu0  ;;  %v2499_v26 = vpack.c.bf16 %v1555_v19, %v1554_v18  ;;  %v1538_v28 = vld [vmem:[%s3676_s17 + $0x40] sm:$0xff] }
 0x7a8   :  { %v2084_v31 = vpop.f32.mrb[7].mxu0 }
 0x7a9   :  { %v1269_v32 = vadd.f32 %v1888_v29, %v1268_v30  ;;  %v1539_v29 = vld [vmem:[%s3676_s17 + $0x48] sm:$0xff]  ;;  %v2528_v30 = vpack.c.bf16 %v1571_v25, %v1570_v24  ;;  %v1718_v25 = vld [vmem:[%s3687_s8] sm:$0xf] }
 0x7aa   :  { %v2501_v31 = vpack.c.bf16 %v1539_v29, %v1538_v28 }
 0x7ab   :  { %v1272_v33 = vmul.f32 0.083333336, %v1269_v32  ;;  %v1572_v32 = vld [vmem:[%s3676_s17 + $0x150] sm:$0xff] }
 0x7ad   :  { %v1273_v34 = vmul.f32 %v1272_v33, %v1272_v33 }
 0x7af   :  { %v1275_v35 = vrot.slane %v1273_v34, 7 }
 0x7b1   :  { %v1277_v36 = vsub.f32 %v1272_v33, %v1275_v35  ;;  %v1556_v35 = vld [vmem:[%s3676_s17 + $0xd0] sm:$0xff] }
 0x7b3   :  { %v1278_v37 = vmax.f32 %v1277_v36, 0.0  ;;  %v1557_v36 = vld [vmem:[%s3676_s17 + $0xd8] sm:$0xff] }
 0x7b5   :  { %v1279_v39 = vadd.f32 1e-05, %v1278_v37  ;;  %v2503_v37 = vpack.c.bf16 %v1557_v36, %v1556_v35 }
 0x7b7   :  { %2557 = vrsqrt.f32 %v1279_v39  ;;  %v1540_v39 = vld [vmem:[%s3676_s17 + $0x50] sm:$0xff] }
 0x7c1   :  { %v2558_v41 = vpop.eup %2557 }
 0x7c2   :  { %v1288_v42 = vmul.f32 %v2558_v41, %v1747_v40  ;;  %v1541_v40 = vld [vmem:[%s3676_s17 + $0x58] sm:$0xff] }
 0x7c3   :  { %v2505_v41 = vpack.c.bf16 %v1541_v40, %v1540_v39 }
 0x7c4   :  { %v1291_v43 = vrot.slane %v1288_v42, 1  ;;  %v1574_v42 = vld [vmem:[%s3676_s17 + $0x160] sm:$0xff] }
 0x7c6   :  { %v1293_v45 = vmul.f32 %v1291_v43, %v1272_v33  ;;  %v1573_v33 = vld [vmem:[%s3676_s17 + $0x158] sm:$0xff] }
 0x7c7   :  { %v2531_v34 = vpack.c.bf16 %v1573_v33, %v1572_v32 }
 0x7c8   :  { %v1294_v51 = vsub.f32 %v1289_v44, %v1293_v45  ;;  %v1558_v45 = vld [vmem:[%s3676_s17 + $0xe0] sm:$0xff] }
 0x7c9   :  { %v2507_v23 = vpack.c.bf16 %v1559_v46, %v1558_v45 }
 0x7ca   :  { %v1299_v52 = vrot.slane %v1294_v51, %v2920_v27  ;;  %v2509_v51 = vpack.c.bf16 %v1543_v48, %v1542_v47 }
 0x7cc   :  { %v1301_v60 = vsel %vm217_vm2, %v1291_v43, %v1299_v52  ;;  %v1575_v43 = vld [vmem:[%s3676_s17 + $0x168] sm:$0xff]  ;;  %v2537_v52 = vpack.c.bf16 %v1577_v50, %v1576_v49 }
 0x7cd   :  { %1415 = vmatmul.mubr.f32.vlgmr.msra.gmra.mrb[12].mxu1 %v1301_v60  ;;  %2118 = vmatmul.mubr.f32.vlgmr.msra.gmra.mrb[8].mxu0 %v1301_v60  ;;  %v2534_v44 = vpack.c.bf16 %v1575_v43, %v1574_v42 }
 0x7ce   :  { %2517 = vmatpush3.bf16.msra.mxu0 %v2516_v53  ;;  %2486 = vmatpush3.bf16.msra.mxu1 %v2485_v54  ;;  %v1560_v53 = vld [vmem:[%s3676_s17 + $0xf0] sm:$0xff]  ;;  %v1561_v54 = vld [vmem:[%s3676_s17 + $0xf8] sm:$0xff] }
 0x7cf   :  { %2518 = vmatprep.subr.bf16.mxu0 %v2665_v0  ;;  %2488 = vmatprep.subr.bf16.mxu1 %v2487_v57  ;;  %v2511_v55 = vpack.c.bf16 %v1561_v54, %v1560_v53 }
 0x7d0   :  { %2152 = vmatprep.mubr.msk.f32.mxu0 %vm2666_vm0, %v2667_v1  ;;  %v1536_v1 = vld [vmem:[%s3676_s17 + $0x30] sm:$0xff] }
 0x7d1   :  { %v2497_v22 = vpack.c.bf16 %v1537_v17, %v1536_v1 }
 0x7d2   :  { %2520 = vmatpush3.bf16.msra.mxu0 %v2519_v63  ;;  %2490 = vmatpush3.bf16.msra.mxu1 %v2489_v2 }
 0x7d3   :  { %2521 = vmatprep.subr.bf16.mxu0 %v2665_v0  ;;  %2492 = vmatprep.subr.bf16.mxu1 %v2491_v5 }
 0x7d6   :  { %2523 = vmatpush3.bf16.msra.mxu0 %v2522_v9  ;;  %2494 = vmatpush3.bf16.msra.mxu1 %v2493_v10 }
 0x7d7   :  { %2524 = vmatprep.subr.bf16.mxu0 %v2665_v0  ;;  %2496 = vmatprep.subr.bf16.mxu1 %v2495_v16 }
 0x7da   :  { %2526 = vmatpush3.bf16.msra.mxu0 %v2525_v21  ;;  %2498 = vmatpush3.bf16.msra.mxu1 %v2497_v22 }
 0x7db   :  { %2527 = vmatprep.subr.bf16.mxu0 %v2665_v0  ;;  %2500 = vmatprep.subr.bf16.mxu1 %v2499_v26 }
 0x7de   :  { %2529 = vmatpush3.bf16.msra.mxu0 %v2528_v30  ;;  %2502 = vmatpush3.bf16.msra.mxu1 %v2501_v31 }
 0x7df   :  { %2530 = vmatprep.subr.bf16.mxu0 %v2665_v0  ;;  %2504 = vmatprep.subr.bf16.mxu1 %v2503_v37 }
 0x7e2   :  { %2532 = vmatpush3.bf16.msra.mxu0 %v2531_v34  ;;  %2506 = vmatpush3.bf16.msra.mxu1 %v2505_v41 }
 0x7e3   :  { %2533 = vmatprep.subr.bf16.mxu0 %v2665_v0  ;;  %2508 = vmatprep.subr.bf16.mxu1 %v2507_v23 }
 0x7e6   :  { %2535 = vmatpush3.bf16.msra.mxu0 %v2534_v44  ;;  %2510 = vmatpush3.bf16.msra.mxu1 %v2509_v51 }
 0x7e7   :  { %2536 = vmatprep.subr.bf16.mxu0 %v2665_v0  ;;  %v1544_v0 = vld [vmem:[%s3676_s17 + $0x70] sm:$0xff]  ;;  %2512 = vmatprep.subr.bf16.mxu1 %v2511_v55  ;;  %s2668_s17 = smov 112  }
 0x7e8   :  { %v2513_v57 = vpack.c.bf16 %v1545_v56, %v1544_v0 }
 0x7ea   :  { %2538 = vmatpush3.bf16.msra.mxu0 %v2537_v52  ;;  %2514 = vmatpush3.bf16.msra.mxu1 %v2513_v57 }
 0x8a0   :  { %v1416_v58 = vpop.f32.mrb[12].mxu1  ;;  %v1487_v59 = vpop.f32.mrb[8].mxu0 }
 0x8a1   :  { %v1494_v60 = vrot.slane %v1416_v58, %v2920_v27  ;;  %v1502_v61 = vrot.slane %v1487_v59, %v2920_v27  ;;  %v1418_v62 = vpop.f32.mrb[13].mxu1  ;;  %v2119_v63 = vpop.f32.mrb[9].mxu0  ;;  %v1509_v4 = vrot.slane %v1416_v58, %v3058_v38  ;;  %v1517_v6 = vrot.slane %v1487_v59, %v3058_v38 }
 0x8a2   :  { %v1498_v2 = vrot.slane %v1418_v62, %v2920_v27  ;;  %v1513_v7 = vrot.slane %v1418_v62, %v3058_v38 }
 0x8a3   :  { %v1503_v3 = vmul.f32 %v1494_v60, %v3447_v14  ;;  %v1505_v5 = vmul.f32 %v3459_v20, %v1502_v61 }
 0x8a4   :  { %v1504_v11 = vmul.f32 %v1498_v2, %v3453_v15 }
 0x8a5   :  { %v1518_v8 = vadd.f32 %v1509_v4, %v1503_v3  ;;  %v1520_v9 = vadd.f32 %v1517_v6, %v1505_v5 }
 0x8a6   :  { %v1519_v10 = vadd.f32 %v1513_v7, %v1504_v11 }
 0x8a7   :  { %vm1523_vm8 = vcmp.gt.f32.partialorder %v1520_v9, 0.0  ;;  %v1526_v12 = vmul.f32 0.2, %v1520_v9  ;;  %v1524_v13 = vmul.f32 0.2, %v1518_v8  ;;  %vm1521_vm10 = vcmp.gt.f32.partialorder %v1518_v8, 0.0 }
 0x8a8   :  { %vm1522_vm9 = vcmp.gt.f32.partialorder %v1519_v10, 0.0  ;;  %v1525_v27 = vmul.f32 0.2, %v1519_v10 }
 0x8a9   :  { %v1529_v14 = vsel %vm1523_vm8, %v1520_v9, %v1526_v12  ;;  %v1527_v20 = vsel %vm1521_vm10, %v1518_v8, %v1524_v13 }
 0x8aa   :  { %2153 = vmatmul.mubr.f32.vlgmr.msra.gmra.mrb[10].mxu0 %v1529_v14  ;;  %v1528_v16 = vsel %vm1522_vm9, %v1519_v10, %v1525_v27 }
 0x8ab   :  { %1642 = vmatprep.mubr.f32.mxu1 %v1528_v16 }
 0x8ac   :  { %1643 = vmatmul.mubr.f32.vlgmr.msra.gmra.mrb[14].mxu1 %v1527_v20 }
 0x97d   :  { %v1714_v1 = vpop.f32.mrb[10].mxu0 }
 0x97e   :  { %v2154_v17 = vpop.f32.mrb[11].mxu0 }
 0x97f   :  { %v1955_v15 = vpop.f32.mrb[14].mxu1 }
 0x980   :  { %v1956_v18 = vpop.f32.mrb[15].mxu1 }
 0x981   :  { %v1957_v38 = vadd.f32 %v1956_v18, %v1955_v15 }
 0x983   :  { %v1715_v19 = vadd.f32 %v1957_v38, %v1714_v1 }
 0x985   :  { %v1719_v21 = vmul.f32 0.5, %v1715_v19 }
 0x987   :  { %v1720_v22 = vmul.f32 1.442695, %v1719_v21 }
 0x989   :  { %2559 = vpow2.f32 %v1720_v22 }
 0x993   :  { %v2560_v24 = vpop.eup %2559 }
 0x994   :  { %1723 = vrot.lane.b32.xlu0 %v2560_v24, %s2668_s17 }
 0x998   :  { %1729 = vrot.lane.b32.xlu0 %v1715_v19, %s3686_s25 }
 0xa06   :  { %v1724_v26 = vpop.permute.xlu0 %1723 }
 0xa07   :  { %v1726_v28 = vmul.f32 %v1724_v26, %v1718_v25 }
 0xa09   :  { %v1727_v29 = vadd.f32 %v1726_v28, %v1715_v19 }
 0xa0a   :  { %v1730_v30 = vpop.permute.xlu0 %1729 }
 0xa0b   :  { %v1733_v31 = vsel %vm1732_vm11, %v1727_v29, %v1730_v30 }
 0xa0c   :  { %1735 = vst.msk [vmem:[%s3688_s23] sm:$0xf] %vm1734_vm12, %v1733_v31 }
 0xa0d   :  { %1740 = vsyncpa [#allocation3], 1 }
 0xa0e   :  { %1741 = vsyncpa [#allocation5], 1 }
 0xa0f   :  { %1742 = vsyncpa [#allocation8], 1 }

</bundles_post_ra>
